<compile_context>
chip_gen: v5e
topology: v5e:2x2
jax: 0.10.0
libtpu: 0.0.40
codegen_flags: <defaults>
</compile_context>

<pallas_src>
import functools

import jax
import jax.numpy as jnp
from jax import lax
from jax.experimental import pallas as pl
from jax.experimental.pallas import tpu as pltpu


def _round_up(x, m):
    return ((x + m - 1) // m) * m


def _vmem_capacity_bytes():
    try:
        return int(pltpu.get_tpu_info().vmem_capacity_bytes)
    except Exception:
        return 64 * 1024 * 1024   # conservative (v7x physical VMEM)


# --------------------- Kernel 1: fused-gate GRU recurrence ------------------ #
def gru_kernel(e_ref, cemb_ref, lens_ref,
               wic_ref, wie_ref, bi_ref, wh_ref, bhn_ref,
               hs_ref,
               h_sc, ic_sc, ix_sc):
    """Single-layer GRU (PyTorch gate semantics), T-block / batch-block tiled.

    e_ref   : [T_BLK*NBLK, W]  shifted word embeddings for this block (bf16)
    cemb_ref: [NBLK, 2H]       time-constant context embeddings (f32)
    lens_ref: [NBLK, 1]        per-row sequence lengths (int32)
    wic_ref : [2H, GP]         fused input gates, cembeds rows (f32)
    wie_ref : [W,  GP]         fused input gates, embedding rows (bf16)
    bi_ref  : [1,  GP]         b_i(cat) + [b_hr, b_hz, 0] folded (f32)
    wh_ref  : [HP, GP]         fused hidden gates (f32)
    bhn_ref : [1,  HP]         hidden bias of the n gate (inside r*(...))
    hs_ref  : [T_BLK*NBLK, HP] output: masked hidden states (bf16)
    h_sc    : [NBLK, HP]       hidden-state carry across T-blocks
    ic_sc   : [NBLK, GP]       time-constant input-gate term (carried)
    ix_sc   : [T_BLK*NBLK, GP] per-block e@wie result (flat, sliced per step)
    """
    t_blk = pl.program_id(1)
    NBLK = cemb_ref.shape[0]
    HP = h_sc.shape[1]
    GP = ix_sc.shape[1]
    T_BLK = ix_sc.shape[0] // NBLK

    # ---- once per batch block: reset carry, precompute time-constant term ----
    @pl.when(t_blk == 0)
    def _():
        h_sc[...] = jnp.zeros_like(h_sc)
        ic_sc[...] = (jnp.dot(cemb_ref[...], wic_ref[...],
                              preferred_element_type=jnp.float32) + bi_ref[...])

    # ---- per T-block: one batched input-gate matmul (bf16 in, f32 acc) ----
    ix_sc[...] = jnp.dot(e_ref[...], wie_ref[...],
                         preferred_element_type=jnp.float32)

    # ---- hoisted loop invariants ----
    wh = wh_ref[...]                                             # keep out of loop
    ic = ic_sc[...]
    lens = lens_ref[...]                                         # [NBLK, 1] int32
    bhn_b = jnp.broadcast_to(bhn_ref[...], (NBLK, HP))
    t0 = t_blk * T_BLK

    # ---- serial recurrence: one [NBLK,HP]x[HP,GP] matmul + gates per step ----
    def step(lt, carry):
        h = h_sc[...]
        off = pl.multiple_of(lt * NBLK, NBLK)
        gi = ix_sc[pl.ds(off, NBLK), :] + ic                     # [NBLK, GP]
        gh = jnp.dot(h, wh, preferred_element_type=jnp.float32)  # [NBLK, GP]
        r = jax.nn.sigmoid(gi[:, 0:HP] + gh[:, 0:HP])
        z = jax.nn.sigmoid(gi[:, HP:2 * HP] + gh[:, HP:2 * HP])
        n = jnp.tanh(gi[:, 2 * HP:3 * HP] + r * (gh[:, 2 * HP:3 * HP] + bhn_b))
        h_new = (1.0 - z) * n + z * h
        h_sc[...] = h_new
        # pad_packed_sequence => zeros past each length; W_out has no bias, so
        # masking the emitted hidden state reproduces worddis exactly.
        masked = jnp.where(lens > (t0 + lt), h_new, 0.0)
        hs_ref[pl.ds(off, NBLK), :] = masked.astype(hs_ref.dtype)
        return carry

    lax.fori_loop(0, T_BLK, step, 0, unroll=min(8, T_BLK))


# --------------------- Kernel 2: tiled vocab projection --------------------- #
def vocab_proj_kernel(h_ref, w_ref, o_ref):
    o_ref[...] = jnp.dot(h_ref[...], w_ref[...],
                         preferred_element_type=jnp.float32)


# ------------------------------- Wrapper ----------------------------------- #
def decoder_forward(cembeds, r_utts, r_ulens, params):
    """Pallas-backed equivalent of Decoder.forward."""
    N, T = r_utts.shape
    H = params["whr"].shape[0]
    W = params["embed"].shape[1]
    V = params["wout"].shape[1]

    HP = _round_up(H, 128)           # lane-aligned per-gate width
    GP = 3 * HP                      # fused gate dimension (lane-tile aligned)

    # ---- batch blocking (outer "parallel" grid axis) ----
    NBLK = 256 if N >= 256 else _round_up(N, 8)
    Np = _round_up(N, NBLK)
    num_b = Np // NBLK

    # ---- T blocking sized from VMEM capacity (v5e/v6e/v7x portable) ----
    vmem_cap = _vmem_capacity_bytes()
    budget = min(vmem_cap, 64 * 1024 * 1024) // 3
    per_t_row = NBLK * (2 * 2 * W           # e block, bf16, double-buffered
                        + 2 * 2 * HP        # hs block, bf16, double-buffered
                        + 4 * GP)           # ix scratch, f32
    T_BLK = int(max(1, min(T, budget // max(per_t_row, 1))))
    Tp = _round_up(T, T_BLK)
    num_t = Tp // T_BLK

    # ---- fuse + lane-pad GRU weights (each gate padded to HP columns) ----
    def pad_gate(w):                 # [*, H] -> [*, HP]
        return jnp.pad(w, ((0, 0), (0, HP - H)))

    wi_cat = jnp.concatenate([pad_gate(params["wir"]), pad_gate(params["wiz"]),
                              pad_gate(params["win"])], axis=1)        # [2H+W, GP]
    wh_cat = jnp.concatenate([pad_gate(params["whr"]), pad_gate(params["whz"]),
                              pad_gate(params["whn"])], axis=1)        # [H, GP]
    wh_cat = jnp.pad(wh_cat, ((0, HP - H), (0, 0)))                    # [HP, GP]
    # b_hr / b_hz are purely additive inside sigmoid -> fold into the input bias.
    bi_cat = jnp.concatenate([pad_gate(params["bir"] + params["bhr"]),
                              pad_gate(params["biz"] + params["bhz"]),
                              pad_gate(params["bin"])], axis=1)        # [1, GP]
    bhn_p = pad_gate(params["bhn"])                                    # [1, HP]
    wic = wi_cat[:2 * H]                                               # [2H, GP] f32
    wie = wi_cat[2 * H:].astype(jnp.bfloat16)                          # [W,  GP] bf16

    # ---- glue: embedding gather, teacher-forcing shift, (b,t,n) layout ----
    rwembeds = jnp.take(params["embed"], r_utts, axis=0)               # [N, T, W]
    e_tm = jnp.transpose(rwembeds, (1, 0, 2))                          # [T, N, W]
    e_shift = jnp.concatenate(
        [jnp.zeros((1, N, W), e_tm.dtype), e_tm[:-1]], axis=0)         # [T, N, W]
    e_p = jnp.pad(e_shift, ((0, Tp - T), (0, Np - N), (0, 0)))
    e_ord = (e_p.reshape(Tp, num_b, NBLK, W)
             .transpose(1, 0, 2, 3)
             .reshape(num_b * Tp * NBLK, W)
             .astype(jnp.bfloat16))

    cemb_p = jnp.pad(cembeds.astype(jnp.float32), ((0, Np - N), (0, 0)))
    lens_p = jnp.pad(r_ulens.astype(jnp.int32), (0, Np - N)).reshape(Np, 1)

    M = num_b * Tp * NBLK            # total emitted rows, order (b, t, n)

    gru_cost = pl.CostEstimate(
        flops=int(2 * M * (W + HP) * GP + 2 * Np * 2 * H * GP * num_t),
        transcendentals=int(3 * M * HP),
        bytes_accessed=int(M * W * 2 + M * HP * 2
                           + (2 * H * GP + HP * GP + GP + HP) * 4 + W * GP * 2
                           + Np * (2 * H + 1) * 4))

    est_vmem = (T_BLK * NBLK * (2 * 2 * W + 2 * 2 * HP + 4 * GP)
                + NBLK * (HP + GP) * 4
                + (2 * H * GP + HP * GP + GP + HP) * 4 + W * GP * 2
                + 2 * NBLK * (2 * H + 1) * 4)
    vmem_limit = int(min(max(2 * est_vmem, 16 * 1024 * 1024), 40 * 1024 * 1024))

    hs = pl.pallas_call(
        gru_kernel,
        out_shape=jax.ShapeDtypeStruct((M, HP), jnp.bfloat16),
        grid=(num_b, num_t),
        in_specs=[
            pl.BlockSpec((T_BLK * NBLK, W), lambda b, t: (b * num_t + t, 0)),
            pl.BlockSpec((NBLK, 2 * H), lambda b, t: (b, 0)),
            pl.BlockSpec((NBLK, 1), lambda b, t: (b, 0)),
            pl.BlockSpec((2 * H, GP), lambda b, t: (0, 0)),
            pl.BlockSpec((W, GP), lambda b, t: (0, 0)),
            pl.BlockSpec((1, GP), lambda b, t: (0, 0)),
            pl.BlockSpec((HP, GP), lambda b, t: (0, 0)),
            pl.BlockSpec((1, HP), lambda b, t: (0, 0)),
        ],
        out_specs=pl.BlockSpec((T_BLK * NBLK, HP), lambda b, t: (b * num_t + t, 0)),
        scratch_shapes=[pltpu.VMEM((NBLK, HP), jnp.float32),
                        pltpu.VMEM((NBLK, GP), jnp.float32),
                        pltpu.VMEM((T_BLK * NBLK, GP), jnp.float32)],
        compiler_params=pltpu.CompilerParams(
            dimension_semantics=("parallel", "arbitrary"),
            vmem_limit_bytes=vmem_limit),
        cost_estimate=gru_cost,
    )(e_ord, cemb_p, lens_p, wic, wie, bi_cat, wh_cat, bhn_p)

    # ---- batched, grid-tiled vocab projection (bf16 in, f32 acc) ----
    tv = min(512, _round_up(V, 128))
    Vp = _round_up(V, tv)
    tm = 512 if M >= 512 else _round_up(M, 8)
    Mp = _round_up(M, tm)

    wout = jnp.pad(params["wout"], ((0, HP - H), (0, Vp - V))).astype(jnp.bfloat16)
    hs_flat = hs
    if Mp != M:
        hs_flat = jnp.pad(hs_flat, ((0, Mp - M), (0, 0)))

    proj_cost = pl.CostEstimate(
        flops=int(2 * Mp * HP * Vp),
        transcendentals=0,
        bytes_accessed=int(Mp * HP * 2 + HP * Vp * 2 + Mp * Vp * 4))

    # Stream the LARGER operand from HBM exactly once (its block index follows
    # the outer grid axis); the smaller one is re-streamed per outer step.
    if HP * Vp >= Mp * HP:           # W_out is the big operand (typical vocab)
        grid = (Vp // tv, Mp // tm)
        in_specs = [pl.BlockSpec((tm, HP), lambda vj, mi: (mi, 0)),
                    pl.BlockSpec((HP, tv), lambda vj, mi: (0, vj))]
        out_spec = pl.BlockSpec((tm, tv), lambda vj, mi: (mi, vj))
    else:
        grid = (Mp // tm, Vp // tv)
        in_specs = [pl.BlockSpec((tm, HP), lambda mi, vj: (mi, 0)),
                    pl.BlockSpec((HP, tv), lambda mi, vj: (0, vj))]
        out_spec = pl.BlockSpec((tm, tv), lambda mi, vj: (mi, vj))

    out = pl.pallas_call(
        vocab_proj_kernel,
        out_shape=jax.ShapeDtypeStruct((Mp, Vp), jnp.float32),
        grid=grid,
        in_specs=in_specs,
        out_specs=out_spec,
        compiler_params=pltpu.CompilerParams(
            dimension_semantics=("parallel", "parallel")),
        cost_estimate=proj_cost,
    )(hs_flat, wout)

    # ---- un-permute: (b, t, n) rows -> [N, T, V] ----
    out = out[:M, :V].reshape(num_b, Tp, NBLK, V)
    out = jnp.transpose(out, (0, 2, 1, 3)).reshape(Np, Tp, V)
    return out[:N, :T, :]


# -------------------------- Pure-JAX reference ------------------------------ #
def decoder_forward_ref(cembeds, r_utts, r_ulens, params):
    N, T = r_utts.shape
    H = params["whr"].shape[0]
    W = params["embed"].shape[1]

    rwembeds = jnp.take(params["embed"], r_utts, axis=0)
    start_pad = jnp.zeros((N, 1, W), dtype=rwembeds.dtype)
    d_rwembeds = jnp.concatenate([start_pad, rwembeds[:, :-1, :]], axis=1)
    cemb_rep = jnp.broadcast_to(cembeds[:, None, :], (N, T, 2 * H))
    dec_in = jnp.concatenate([cemb_rep, d_rwembeds], axis=2)
    x = jnp.transpose(dec_in, (1, 0, 2)).astype(jnp.float32)           # [T, N, D]
    mask = (jnp.arange(T)[:, None] < r_ulens[None, :]).astype(jnp.float32)[:, :, None]

    def step(h, xt):
        i_r = xt @ params["wir"] + params["bir"]
        i_z = xt @ params["wiz"] + params["biz"]
        i_n = xt @ params["win"] + params["bin"]
        h_r = h @ params["whr"] + params["bhr"]
        h_z = h @ params["whz"] + params["bhz"]
        h_n = h @ params["whn"] + params["bhn"]
        r = jax.nn.sigmoid(i_r + h_r)
        z = jax.nn.sigmoid(i_z + h_z)
        n = jnp.tanh(i_n + r * h_n)
        h_new = (1.0 - z) * n + z * h
        return h_new, h_new

    _, hs = lax.scan(step, jnp.zeros((N, H), jnp.float32), x)
    hs = hs * mask
    out = jnp.einsum("tnh,hv->tnv", hs, params["wout"])
    return jnp.transpose(out, (1, 0, 2))


# ------------------------------- Driver ------------------------------------ #
def make_params(key, vocab_size, word_size, hidden_size):
    D_in = 2 * hidden_size + word_size
    keys = jax.random.split(key, 16)
    s = 0.1
    return {
        "embed": jax.random.normal(keys[0], (vocab_size, word_size), jnp.float32) * s,
        "wir": jax.random.normal(keys[1], (D_in, hidden_size), jnp.float32) * s,
        "wiz": jax.random.normal(keys[2], (D_in, hidden_size), jnp.float32) * s,
        "win": jax.random.normal(keys[3], (D_in, hidden_size), jnp.float32) * s,
        "whr": jax.random.normal(keys[4], (hidden_size, hidden_size), jnp.float32) * s,
        "whz": jax.random.normal(keys[5], (hidden_size, hidden_size), jnp.float32) * s,
        "whn": jax.random.normal(keys[6], (hidden_size, hidden_size), jnp.float32) * s,
        "bir": jax.random.normal(keys[7], (1, hidden_size), jnp.float32) * s,
        "biz": jax.random.normal(keys[8], (1, hidden_size), jnp.float32) * s,
        "bin": jax.random.normal(keys[9], (1, hidden_size), jnp.float32) * s,
        "bhr": jax.random.normal(keys[10], (1, hidden_size), jnp.float32) * s,
        "bhz": jax.random.normal(keys[11], (1, hidden_size), jnp.float32) * s,
        "bhn": jax.random.normal(keys[12], (1, hidden_size), jnp.float32) * s,
        "wout": jax.random.normal(keys[13], (hidden_size, vocab_size), jnp.float32) * s,
    }


if __name__ == "__main__":
    # Small, forward-consistent shapes.
    vocab_size, word_size, hidden_size = 128, 16, 32
    num_utts, num_words = 8, 8

    key = jax.random.PRNGKey(0)
    k_p, k_c, k_u, k_l = jax.random.split(key, 4)

    params = make_params(k_p, vocab_size, word_size, hidden_size)
    cembeds = jax.random.normal(k_c, (num_utts, 2 * hidden_size), jnp.float32)
    r_utts = jax.random.randint(k_u, (num_utts, num_words), 0, vocab_size, jnp.int32)
    r_ulens = jax.random.randint(k_l, (num_utts,), 1, num_words + 1, jnp.int32)

    worddis = jax.jit(functools.partial(decoder_forward, params=params))(
        cembeds, r_utts, r_ulens)
    worddis = jax.block_until_ready(worddis)

    ref = decoder_forward_ref(cembeds, r_utts, r_ulens, params)
    assert worddis.shape == (num_utts, num_words, vocab_size)
    # Tolerance accounts for the bf16 (f32-accumulated) streaming matmuls
    # (e@W_ie and hs@W_out); the GRU recurrence itself stays f32.
    assert jnp.allclose(worddis, ref, rtol=2e-2, atol=5e-3), "mismatch vs JAX reference"

    print("KERNEL_OK")
</pallas_src>

<mosaic_0001>
module attributes {stable_mosaic.version = 11 : i64} {
  func.func @vocab_proj_kernel(%arg0: i32, %arg1: i32, %arg2: memref<64x128xbf16, #tpu.memory_space<vmem>>, %arg3: memref<128x128xbf16, #tpu.memory_space<vmem>>, %arg4: memref<64x128xf32, #tpu.memory_space<vmem>>) attributes {dimension_semantics = [#tpu.dimension_semantics<parallel>, #tpu.dimension_semantics<parallel>], iteration_bounds = array<i64: 1, 1>, scalar_prefetch = 0 : i64, scratch_operands = 0 : i64, tpu.core_type = #tpu.core_type<tc>, window_params = [{transform_indices = @transform_0, window_bounds = array<i64: 64, 128>}, {transform_indices = @transform_1, window_bounds = array<i64: 128, 128>}, {transform_indices = @transform_2, window_bounds = array<i64: 64, 128>}]} {
    %c0 = arith.constant 0 : index
    %c0_0 = arith.constant 0 : index
    %0 = vector.load %arg2[%c0, %c0_0] : memref<64x128xbf16, #tpu.memory_space<vmem>>, vector<64x128xbf16>
    %c0_1 = arith.constant 0 : index
    %c0_2 = arith.constant 0 : index
    %1 = vector.load %arg3[%c0_1, %c0_2] : memref<128x128xbf16, #tpu.memory_space<vmem>>, vector<128x128xbf16>
    %cst = arith.constant dense<0.000000e+00> : vector<64x128xf32>
    %2 = tpu.matmul %0, %1, %cst {dimension_numbers = #tpu.dot_dimension_numbers<[1], [0], [0], [1], [0, 0, 1, 1], [], []>} : vector<64x128xbf16>, vector<128x128xbf16>, vector<64x128xf32> -> vector<64x128xf32>
    %c0_3 = arith.constant 0 : index
    %c0_4 = arith.constant 0 : index
    %3 = vector.load %arg4[%c0_3, %c0_4] : memref<64x128xf32, #tpu.memory_space<vmem>>, vector<64x128xf32>
    tpu.vector_store %arg4[%c0_3, %c0_4], %2 {strides = array<i32>} : memref<64x128xf32, #tpu.memory_space<vmem>>, vector<64x128xf32>,
    return
  }
  func.func @transform_0(%arg0: i32, %arg1: i32) -> (i32, i32) {
    %c0_i32 = arith.constant 0 : i32
    %c0_i32_0 = arith.constant 0 : i32
    return %arg1, %c0_i32 : i32, i32
  }
  func.func @transform_1(%arg0: i32, %arg1: i32) -> (i32, i32) {
    %c0_i32 = arith.constant 0 : i32
    %c0_i32_0 = arith.constant 0 : i32
    return %c0_i32, %arg0 : i32, i32
  }
  func.func @transform_2(%arg0: i32, %arg1: i32) -> (i32, i32) {
    %c0_i32 = arith.constant 0 : i32
    return %arg1, %arg0 : i32, i32
  }
}

module attributes {stable_mosaic.version = 11 : i64} {
  func.func @gru_kernel(%arg0: i32, %arg1: i32, %arg2: memref<64x16xbf16, #tpu.memory_space<vmem>>, %arg3: memref<8x64xf32, #tpu.memory_space<vmem>>, %arg4: memref<8x1xi32, #tpu.memory_space<vmem>>, %arg5: memref<64x384xf32, #tpu.memory_space<vmem>>, %arg6: memref<16x384xbf16, #tpu.memory_space<vmem>>, %arg7: memref<1x384xf32, #tpu.memory_space<vmem>>, %arg8: memref<128x384xf32, #tpu.memory_space<vmem>>, %arg9: memref<1x128xf32, #tpu.memory_space<vmem>>, %arg10: memref<64x128xbf16, #tpu.memory_space<vmem>>, %arg11: memref<8x128xf32, #tpu.memory_space<vmem>>, %arg12: memref<8x384xf32, #tpu.memory_space<vmem>>, %arg13: memref<64x384xf32, #tpu.memory_space<vmem>>) attributes {dimension_semantics = [#tpu.dimension_semantics<parallel>, #tpu.dimension_semantics<arbitrary>], iteration_bounds = array<i64: 1, 1>, scalar_prefetch = 0 : i64, scratch_operands = 3 : i64, tpu.core_type = #tpu.core_type<tc>, window_params = [{transform_indices = @transform_0, window_bounds = array<i64: 64, 16>}, {transform_indices = @transform_1, window_bounds = array<i64: 8, 64>}, {transform_indices = @transform_2, window_bounds = array<i64: 8, 1>}, {pipeline_mode = #tpu.pipeline_mode<synchronous>, transform_indices = @transform_3, window_bounds = array<i64: 64, 384>}, {pipeline_mode = #tpu.pipeline_mode<synchronous>, transform_indices = @transform_4, window_bounds = array<i64: 16, 384>}, {pipeline_mode = #tpu.pipeline_mode<synchronous>, transform_indices = @transform_5, window_bounds = array<i64: 1, 384>}, {pipeline_mode = #tpu.pipeline_mode<synchronous>, transform_indices = @transform_6, window_bounds = array<i64: 128, 384>}, {pipeline_mode = #tpu.pipeline_mode<synchronous>, transform_indices = @transform_7, window_bounds = array<i64: 1, 128>}, {transform_indices = @transform_8, window_bounds = array<i64: 64, 128>}]} {
    %c0_i32 = arith.constant 0 : i32
    %0 = arith.cmpi eq, %arg1, %c0_i32 : i32
    %1 = arith.extui %0 : i1 to i32
    %c0_i32_0 = arith.constant 0 : i32
    %2 = arith.cmpi ne, %1, %c0_i32_0 : i32
    scf.if %2 {
      %cst_112 = arith.constant 0.000000e+00 : f32
      %374 = vector.broadcast %cst_112 : f32 to vector<8x128xf32>
      %c0_113 = arith.constant 0 : index
      %c0_114 = arith.constant 0 : index
      %375 = vector.load %arg11[%c0_113, %c0_114] : memref<8x128xf32, #tpu.memory_space<vmem>>, vector<8x128xf32>
      tpu.vector_store %arg11[%c0_113, %c0_114], %374 {strides = array<i32>} : memref<8x128xf32, #tpu.memory_space<vmem>>, vector<8x128xf32>,
      %c0_115 = arith.constant 0 : index
      %c0_116 = arith.constant 0 : index
      %376 = vector.load %arg3[%c0_115, %c0_116] : memref<8x64xf32, #tpu.memory_space<vmem>>, vector<8x64xf32>
      %c0_117 = arith.constant 0 : index
      %c0_118 = arith.constant 0 : index
      %377 = vector.load %arg5[%c0_117, %c0_118] : memref<64x384xf32, #tpu.memory_space<vmem>>, vector<64x384xf32>
      %cst_119 = arith.constant dense<0.000000e+00> : vector<8x384xf32>
      %378 = tpu.matmul %376, %377, %cst_119 {dimension_numbers = #tpu.dot_dimension_numbers<[1], [0], [0], [1], [0, 0, 1, 1], [], []>} : vector<8x64xf32>, vector<64x384xf32>, vector<8x384xf32> -> vector<8x384xf32>
      %c0_120 = arith.constant 0 : index
      %c0_121 = arith.constant 0 : index
      %379 = vector.load %arg7[%c0_120, %c0_121] : memref<1x384xf32, #tpu.memory_space<vmem>>, vector<1x384xf32>
      %380 = vector.broadcast %379 : vector<1x384xf32> to vector<8x384xf32>
      %381 = arith.addf %378, %380 : vector<8x384xf32>
      %c0_122 = arith.constant 0 : index
      %c0_123 = arith.constant 0 : index
      %382 = vector.load %arg12[%c0_122, %c0_123] : memref<8x384xf32, #tpu.memory_space<vmem>>, vector<8x384xf32>
      tpu.vector_store %arg12[%c0_122, %c0_123], %381 {strides = array<i32>} : memref<8x384xf32, #tpu.memory_space<vmem>>, vector<8x384xf32>,
    } else {
    }
    %c0 = arith.constant 0 : index
    %c0_1 = arith.constant 0 : index
    %3 = vector.load %arg2[%c0, %c0_1] : memref<64x16xbf16, #tpu.memory_space<vmem>>, vector<64x16xbf16>
    %c0_2 = arith.constant 0 : index
    %c0_3 = arith.constant 0 : index
    %4 = vector.load %arg6[%c0_2, %c0_3] : memref<16x384xbf16, #tpu.memory_space<vmem>>, vector<16x384xbf16>
    %cst = arith.constant dense<0.000000e+00> : vector<64x384xf32>
    %5 = tpu.matmul %3, %4, %cst {dimension_numbers = #tpu.dot_dimension_numbers<[1], [0], [0], [1], [0, 0, 1, 1], [], []>} : vector<64x16xbf16>, vector<16x384xbf16>, vector<64x384xf32> -> vector<64x384xf32>
    %c0_4 = arith.constant 0 : index
    %c0_5 = arith.constant 0 : index
    %6 = vector.load %arg13[%c0_4, %c0_5] : memref<64x384xf32, #tpu.memory_space<vmem>>, vector<64x384xf32>
    tpu.vector_store %arg13[%c0_4, %c0_5], %5 {strides = array<i32>} : memref<64x384xf32, #tpu.memory_space<vmem>>, vector<64x384xf32>,
    %c0_6 = arith.constant 0 : index
    %c0_7 = arith.constant 0 : index
    %7 = vector.load %arg8[%c0_6, %c0_7] : memref<128x384xf32, #tpu.memory_space<vmem>>, vector<128x384xf32>
    %c0_8 = arith.constant 0 : index
    %c0_9 = arith.constant 0 : index
    %8 = vector.load %arg12[%c0_8, %c0_9] : memref<8x384xf32, #tpu.memory_space<vmem>>, vector<8x384xf32>
    %c0_10 = arith.constant 0 : index
    %c0_11 = arith.constant 0 : index
    %9 = vector.load %arg4[%c0_10, %c0_11] : memref<8x1xi32, #tpu.memory_space<vmem>>, vector<8x1xi32>
    %c0_12 = arith.constant 0 : index
    %c0_13 = arith.constant 0 : index
    %10 = vector.load %arg9[%c0_12, %c0_13] : memref<1x128xf32, #tpu.memory_space<vmem>>, vector<1x128xf32>
    %11 = vector.shape_cast %10 : vector<1x128xf32> to vector<1x128xf32>
    %12 = vector.broadcast %11 : vector<1x128xf32> to vector<8x128xf32>
    %c8_i32 = arith.constant 8 : i32
    %13 = arith.muli %arg1, %c8_i32 : i32
    %c0_i32_14 = arith.constant 0 : i32
    %c0_15 = arith.constant 0 : index
    %c0_16 = arith.constant 0 : index
    %14 = vector.load %arg11[%c0_15, %c0_16] : memref<8x128xf32, #tpu.memory_space<vmem>>, vector<8x128xf32>
    %c8_i32_17 = arith.constant 8 : i32
    %15 = arith.muli %c0_i32_14, %c8_i32_17 : i32
    %16 = tpu.assume_multiple %15, 8 : i32
    %17 = arith.index_cast %16 : i32 to index
    %c0_18 = arith.constant 0 : index
    %18 = vector.load %arg13[%17, %c0_18] : memref<64x384xf32, #tpu.memory_space<vmem>>, vector<8x384xf32>
    %19 = arith.addf %18, %8 : vector<8x384xf32>
    %cst_19 = arith.constant dense<0.000000e+00> : vector<8x384xf32>
    %20 = tpu.matmul %14, %7, %cst_19 {dimension_numbers = #tpu.dot_dimension_numbers<[1], [0], [0], [1], [0, 0, 1, 1], [], []>} : vector<8x128xf32>, vector<128x384xf32>, vector<8x384xf32> -> vector<8x384xf32>
    %21 = vector.extract_strided_slice %19 {offsets = [0, 0], sizes = [8, 128], strides = [1, 1]} : vector<8x384xf32> to vector<8x128xf32>
    %22 = vector.extract_strided_slice %20 {offsets = [0, 0], sizes = [8, 128], strides = [1, 1]} : vector<8x384xf32> to vector<8x128xf32>
    %23 = arith.addf %21, %22 : vector<8x128xf32>
    %24 = arith.negf %23 : vector<8x128xf32>
    %25 = math.exp %24 : vector<8x128xf32>
    %cst_20 = arith.constant 1.000000e+00 : f32
    %26 = vector.broadcast %cst_20 : f32 to vector<8x128xf32>
    %27 = arith.addf %26, %25 : vector<8x128xf32>
    %28 = arith.divf %26, %27 : vector<8x128xf32>
    %29 = vector.extract_strided_slice %19 {offsets = [0, 128], sizes = [8, 128], strides = [1, 1]} : vector<8x384xf32> to vector<8x128xf32>
    %30 = vector.extract_strided_slice %20 {offsets = [0, 128], sizes = [8, 128], strides = [1, 1]} : vector<8x384xf32> to vector<8x128xf32>
    %31 = arith.addf %29, %30 : vector<8x128xf32>
    %32 = arith.negf %31 : vector<8x128xf32>
    %33 = math.exp %32 : vector<8x128xf32>
    %cst_21 = arith.constant 1.000000e+00 : f32
    %34 = vector.broadcast %cst_21 : f32 to vector<8x128xf32>
    %35 = arith.addf %34, %33 : vector<8x128xf32>
    %36 = arith.divf %34, %35 : vector<8x128xf32>
    %37 = vector.extract_strided_slice %19 {offsets = [0, 256], sizes = [8, 128], strides = [1, 1]} : vector<8x384xf32> to vector<8x128xf32>
    %38 = vector.extract_strided_slice %20 {offsets = [0, 256], sizes = [8, 128], strides = [1, 1]} : vector<8x384xf32> to vector<8x128xf32>
    %39 = arith.addf %38, %12 : vector<8x128xf32>
    %40 = arith.mulf %28, %39 : vector<8x128xf32>
    %41 = arith.addf %37, %40 : vector<8x128xf32>
    %42 = math.tanh %41 : vector<8x128xf32>
    %cst_22 = arith.constant 1.000000e+00 : f32
    %43 = vector.broadcast %cst_22 : f32 to vector<8x128xf32>
    %44 = arith.subf %43, %36 : vector<8x128xf32>
    %45 = arith.mulf %44, %42 : vector<8x128xf32>
    %46 = arith.mulf %36, %14 : vector<8x128xf32>
    %47 = arith.addf %45, %46 : vector<8x128xf32>
    %c0_23 = arith.constant 0 : index
    %c0_24 = arith.constant 0 : index
    %48 = vector.load %arg11[%c0_23, %c0_24] : memref<8x128xf32, #tpu.memory_space<vmem>>, vector<8x128xf32>
    tpu.vector_store %arg11[%c0_23, %c0_24], %47 {strides = array<i32>} : memref<8x128xf32, #tpu.memory_space<vmem>>, vector<8x128xf32>,
    %49 = arith.addi %13, %c0_i32_14 : i32
    %50 = vector.broadcast %49 : i32 to vector<8x1xi32>
    %51 = arith.cmpi sgt, %9, %50 : vector<8x1xi32>
    %cst_25 = arith.constant 0.000000e+00 : f32
    %52 = vector.shape_cast %51 : vector<8x1xi1> to vector<8x1xi1>
    %53 = vector.broadcast %52 : vector<8x1xi1> to vector<8x128xi1>
    %54 = vector.broadcast %cst_25 : f32 to vector<8x128xf32>
    %55 = arith.select %53, %47, %54 : vector<8x128xi1>, vector<8x128xf32>
    %56 = arith.truncf %55 : vector<8x128xf32> to vector<8x128xbf16>
    %57 = arith.index_cast %16 : i32 to index
    %c0_26 = arith.constant 0 : index
    %58 = vector.load %arg10[%57, %c0_26] : memref<64x128xbf16, #tpu.memory_space<vmem>>, vector<8x128xbf16>
    tpu.vector_store %arg10[%57, %c0_26], %56 {strides = array<i32>} : memref<64x128xbf16, #tpu.memory_space<vmem>>, vector<8x128xbf16>,
    %c1_i32 = arith.constant 1 : i32
    %c0_27 = arith.constant 0 : index
    %c0_28 = arith.constant 0 : index
    %59 = vector.load %arg11[%c0_27, %c0_28] : memref<8x128xf32, #tpu.memory_space<vmem>>, vector<8x128xf32>
    %c8_i32_29 = arith.constant 8 : i32
    %60 = arith.muli %c1_i32, %c8_i32_29 : i32
    %61 = tpu.assume_multiple %60, 8 : i32
    %62 = arith.index_cast %61 : i32 to index
    %c0_30 = arith.constant 0 : index
    %63 = vector.load %arg13[%62, %c0_30] : memref<64x384xf32, #tpu.memory_space<vmem>>, vector<8x384xf32>
    %64 = arith.addf %63, %8 : vector<8x384xf32>
    %cst_31 = arith.constant dense<0.000000e+00> : vector<8x384xf32>
    %65 = tpu.matmul %59, %7, %cst_31 {dimension_numbers = #tpu.dot_dimension_numbers<[1], [0], [0], [1], [0, 0, 1, 1], [], []>} : vector<8x128xf32>, vector<128x384xf32>, vector<8x384xf32> -> vector<8x384xf32>
    %66 = vector.extract_strided_slice %64 {offsets = [0, 0], sizes = [8, 128], strides = [1, 1]} : vector<8x384xf32> to vector<8x128xf32>
    %67 = vector.extract_strided_slice %65 {offsets = [0, 0], sizes = [8, 128], strides = [1, 1]} : vector<8x384xf32> to vector<8x128xf32>
    %68 = arith.addf %66, %67 : vector<8x128xf32>
    %69 = arith.negf %68 : vector<8x128xf32>
    %70 = math.exp %69 : vector<8x128xf32>
    %cst_32 = arith.constant 1.000000e+00 : f32
    %71 = vector.broadcast %cst_32 : f32 to vector<8x128xf32>
    %72 = arith.addf %71, %70 : vector<8x128xf32>
    %73 = arith.divf %71, %72 : vector<8x128xf32>
    %74 = vector.extract_strided_slice %64 {offsets = [0, 128], sizes = [8, 128], strides = [1, 1]} : vector<8x384xf32> to vector<8x128xf32>
    %75 = vector.extract_strided_slice %65 {offsets = [0, 128], sizes = [8, 128], strides = [1, 1]} : vector<8x384xf32> to vector<8x128xf32>
    %76 = arith.addf %74, %75 : vector<8x128xf32>
    %77 = arith.negf %76 : vector<8x128xf32>
    %78 = math.exp %77 : vector<8x128xf32>
    %cst_33 = arith.constant 1.000000e+00 : f32
    %79 = vector.broadcast %cst_33 : f32 to vector<8x128xf32>
    %80 = arith.addf %79, %78 : vector<8x128xf32>
    %81 = arith.divf %79, %80 : vector<8x128xf32>
    %82 = vector.extract_strided_slice %64 {offsets = [0, 256], sizes = [8, 128], strides = [1, 1]} : vector<8x384xf32> to vector<8x128xf32>
    %83 = vector.extract_strided_slice %65 {offsets = [0, 256], sizes = [8, 128], strides = [1, 1]} : vector<8x384xf32> to vector<8x128xf32>
    %84 = arith.addf %83, %12 : vector<8x128xf32>
    %85 = arith.mulf %73, %84 : vector<8x128xf32>
    %86 = arith.addf %82, %85 : vector<8x128xf32>
    %87 = math.tanh %86 : vector<8x128xf32>
    %cst_34 = arith.constant 1.000000e+00 : f32
    %88 = vector.broadcast %cst_34 : f32 to vector<8x128xf32>
    %89 = arith.subf %88, %81 : vector<8x128xf32>
    %90 = arith.mulf %89, %87 : vector<8x128xf32>
    %91 = arith.mulf %81, %59 : vector<8x128xf32>
    %92 = arith.addf %90, %91 : vector<8x128xf32>
    %c0_35 = arith.constant 0 : index
    %c0_36 = arith.constant 0 : index
    %93 = vector.load %arg11[%c0_35, %c0_36] : memref<8x128xf32, #tpu.memory_space<vmem>>, vector<8x128xf32>
    tpu.vector_store %arg11[%c0_35, %c0_36], %92 {strides = array<i32>} : memref<8x128xf32, #tpu.memory_space<vmem>>, vector<8x128xf32>,
    %94 = arith.addi %13, %c1_i32 : i32
    %95 = vector.broadcast %94 : i32 to vector<8x1xi32>
    %96 = arith.cmpi sgt, %9, %95 : vector<8x1xi32>
    %cst_37 = arith.constant 0.000000e+00 : f32
    %97 = vector.shape_cast %96 : vector<8x1xi1> to vector<8x1xi1>
    %98 = vector.broadcast %97 : vector<8x1xi1> to vector<8x128xi1>
    %99 = vector.broadcast %cst_37 : f32 to vector<8x128xf32>
    %100 = arith.select %98, %92, %99 : vector<8x128xi1>, vector<8x128xf32>
    %101 = arith.truncf %100 : vector<8x128xf32> to vector<8x128xbf16>
    %102 = arith.index_cast %61 : i32 to index
    %c0_38 = arith.constant 0 : index
    %103 = vector.load %arg10[%102, %c0_38] : memref<64x128xbf16, #tpu.memory_space<vmem>>, vector<8x128xbf16>
    tpu.vector_store %arg10[%102, %c0_38], %101 {strides = array<i32>} : memref<64x128xbf16, #tpu.memory_space<vmem>>, vector<8x128xbf16>,
    %c2_i32 = arith.constant 2 : i32
    %c0_39 = arith.constant 0 : index
    %c0_40 = arith.constant 0 : index
    %104 = vector.load %arg11[%c0_39, %c0_40] : memref<8x128xf32, #tpu.memory_space<vmem>>, vector<8x128xf32>
    %c8_i32_41 = arith.constant 8 : i32
    %105 = arith.muli %c2_i32, %c8_i32_41 : i32
    %106 = tpu.assume_multiple %105, 8 : i32
    %107 = arith.index_cast %106 : i32 to index
    %c0_42 = arith.constant 0 : index
    %108 = vector.load %arg13[%107, %c0_42] : memref<64x384xf32, #tpu.memory_space<vmem>>, vector<8x384xf32>
    %109 = arith.addf %108, %8 : vector<8x384xf32>
    %cst_43 = arith.constant dense<0.000000e+00> : vector<8x384xf32>
    %110 = tpu.matmul %104, %7, %cst_43 {dimension_numbers = #tpu.dot_dimension_numbers<[1], [0], [0], [1], [0, 0, 1, 1], [], []>} : vector<8x128xf32>, vector<128x384xf32>, vector<8x384xf32> -> vector<8x384xf32>
    %111 = vector.extract_strided_slice %109 {offsets = [0, 0], sizes = [8, 128], strides = [1, 1]} : vector<8x384xf32> to vector<8x128xf32>
    %112 = vector.extract_strided_slice %110 {offsets = [0, 0], sizes = [8, 128], strides = [1, 1]} : vector<8x384xf32> to vector<8x128xf32>
    %113 = arith.addf %111, %112 : vector<8x128xf32>
    %114 = arith.negf %113 : vector<8x128xf32>
    %115 = math.exp %114 : vector<8x128xf32>
    %cst_44 = arith.constant 1.000000e+00 : f32
    %116 = vector.broadcast %cst_44 : f32 to vector<8x128xf32>
    %117 = arith.addf %116, %115 : vector<8x128xf32>
    %118 = arith.divf %116, %117 : vector<8x128xf32>
    %119 = vector.extract_strided_slice %109 {offsets = [0, 128], sizes = [8, 128], strides = [1, 1]} : vector<8x384xf32> to vector<8x128xf32>
    %120 = vector.extract_strided_slice %110 {offsets = [0, 128], sizes = [8, 128], strides = [1, 1]} : vector<8x384xf32> to vector<8x128xf32>
    %121 = arith.addf %119, %120 : vector<8x128xf32>
    %122 = arith.negf %121 : vector<8x128xf32>
    %123 = math.exp %122 : vector<8x128xf32>
    %cst_45 = arith.constant 1.000000e+00 : f32
    %124 = vector.broadcast %cst_45 : f32 to vector<8x128xf32>
    %125 = arith.addf %124, %123 : vector<8x128xf32>
    %126 = arith.divf %124, %125 : vector<8x128xf32>
    %127 = vector.extract_strided_slice %109 {offsets = [0, 256], sizes = [8, 128], strides = [1, 1]} : vector<8x384xf32> to vector<8x128xf32>
    %128 = vector.extract_strided_slice %110 {offsets = [0, 256], sizes = [8, 128], strides = [1, 1]} : vector<8x384xf32> to vector<8x128xf32>
    %129 = arith.addf %128, %12 : vector<8x128xf32>
    %130 = arith.mulf %118, %129 : vector<8x128xf32>
    %131 = arith.addf %127, %130 : vector<8x128xf32>
    %132 = math.tanh %131 : vector<8x128xf32>
    %cst_46 = arith.constant 1.000000e+00 : f32
    %133 = vector.broadcast %cst_46 : f32 to vector<8x128xf32>
    %134 = arith.subf %133, %126 : vector<8x128xf32>
    %135 = arith.mulf %134, %132 : vector<8x128xf32>
    %136 = arith.mulf %126, %104 : vector<8x128xf32>
    %137 = arith.addf %135, %136 : vector<8x128xf32>
    %c0_47 = arith.constant 0 : index
    %c0_48 = arith.constant 0 : index
    %138 = vector.load %arg11[%c0_47, %c0_48] : memref<8x128xf32, #tpu.memory_space<vmem>>, vector<8x128xf32>
    tpu.vector_store %arg11[%c0_47, %c0_48], %137 {strides = array<i32>} : memref<8x128xf32, #tpu.memory_space<vmem>>, vector<8x128xf32>,
    %139 = arith.addi %13, %c2_i32 : i32
    %140 = vector.broadcast %139 : i32 to vector<8x1xi32>
    %141 = arith.cmpi sgt, %9, %140 : vector<8x1xi32>
    %cst_49 = arith.constant 0.000000e+00 : f32
    %142 = vector.shape_cast %141 : vector<8x1xi1> to vector<8x1xi1>
    %143 = vector.broadcast %142 : vector<8x1xi1> to vector<8x128xi1>
    %144 = vector.broadcast %cst_49 : f32 to vector<8x128xf32>
    %145 = arith.select %143, %137, %144 : vector<8x128xi1>, vector<8x128xf32>
    %146 = arith.truncf %145 : vector<8x128xf32> to vector<8x128xbf16>
    %147 = arith.index_cast %106 : i32 to index
    %c0_50 = arith.constant 0 : index
    %148 = vector.load %arg10[%147, %c0_50] : memref<64x128xbf16, #tpu.memory_space<vmem>>, vector<8x128xbf16>
    tpu.vector_store %arg10[%147, %c0_50], %146 {strides = array<i32>} : memref<64x128xbf16, #tpu.memory_space<vmem>>, vector<8x128xbf16>,
    %c3_i32 = arith.constant 3 : i32
    %c0_51 = arith.constant 0 : index
    %c0_52 = arith.constant 0 : index
    %149 = vector.load %arg11[%c0_51, %c0_52] : memref<8x128xf32, #tpu.memory_space<vmem>>, vector<8x128xf32>
    %c8_i32_53 = arith.constant 8 : i32
    %150 = arith.muli %c3_i32, %c8_i32_53 : i32
    %151 = tpu.assume_multiple %150, 8 : i32
    %152 = arith.index_cast %151 : i32 to index
    %c0_54 = arith.constant 0 : index
    %153 = vector.load %arg13[%152, %c0_54] : memref<64x384xf32, #tpu.memory_space<vmem>>, vector<8x384xf32>
    %154 = arith.addf %153, %8 : vector<8x384xf32>
    %cst_55 = arith.constant dense<0.000000e+00> : vector<8x384xf32>
    %155 = tpu.matmul %149, %7, %cst_55 {dimension_numbers = #tpu.dot_dimension_numbers<[1], [0], [0], [1], [0, 0, 1, 1], [], []>} : vector<8x128xf32>, vector<128x384xf32>, vector<8x384xf32> -> vector<8x384xf32>
    %156 = vector.extract_strided_slice %154 {offsets = [0, 0], sizes = [8, 128], strides = [1, 1]} : vector<8x384xf32> to vector<8x128xf32>
    %157 = vector.extract_strided_slice %155 {offsets = [0, 0], sizes = [8, 128], strides = [1, 1]} : vector<8x384xf32> to vector<8x128xf32>
    %158 = arith.addf %156, %157 : vector<8x128xf32>
    %159 = arith.negf %158 : vector<8x128xf32>
    %160 = math.exp %159 : vector<8x128xf32>
    %cst_56 = arith.constant 1.000000e+00 : f32
    %161 = vector.broadcast %cst_56 : f32 to vector<8x128xf32>
    %162 = arith.addf %161, %160 : vector<8x128xf32>
    %163 = arith.divf %161, %162 : vector<8x128xf32>
    %164 = vector.extract_strided_slice %154 {offsets = [0, 128], sizes = [8, 128], strides = [1, 1]} : vector<8x384xf32> to vector<8x128xf32>
    %165 = vector.extract_strided_slice %155 {offsets = [0, 128], sizes = [8, 128], strides = [1, 1]} : vector<8x384xf32> to vector<8x128xf32>
    %166 = arith.addf %164, %165 : vector<8x128xf32>
    %167 = arith.negf %166 : vector<8x128xf32>
    %168 = math.exp %167 : vector<8x128xf32>
    %cst_57 = arith.constant 1.000000e+00 : f32
    %169 = vector.broadcast %cst_57 : f32 to vector<8x128xf32>
    %170 = arith.addf %169, %168 : vector<8x128xf32>
    %171 = arith.divf %169, %170 : vector<8x128xf32>
    %172 = vector.extract_strided_slice %154 {offsets = [0, 256], sizes = [8, 128], strides = [1, 1]} : vector<8x384xf32> to vector<8x128xf32>
    %173 = vector.extract_strided_slice %155 {offsets = [0, 256], sizes = [8, 128], strides = [1, 1]} : vector<8x384xf32> to vector<8x128xf32>
    %174 = arith.addf %173, %12 : vector<8x128xf32>
    %175 = arith.mulf %163, %174 : vector<8x128xf32>
    %176 = arith.addf %172, %175 : vector<8x128xf32>
    %177 = math.tanh %176 : vector<8x128xf32>
    %cst_58 = arith.constant 1.000000e+00 : f32
    %178 = vector.broadcast %cst_58 : f32 to vector<8x128xf32>
    %179 = arith.subf %178, %171 : vector<8x128xf32>
    %180 = arith.mulf %179, %177 : vector<8x128xf32>
    %181 = arith.mulf %171, %149 : vector<8x128xf32>
    %182 = arith.addf %180, %181 : vector<8x128xf32>
    %c0_59 = arith.constant 0 : index
    %c0_60 = arith.constant 0 : index
    %183 = vector.load %arg11[%c0_59, %c0_60] : memref<8x128xf32, #tpu.memory_space<vmem>>, vector<8x128xf32>
    tpu.vector_store %arg11[%c0_59, %c0_60], %182 {strides = array<i32>} : memref<8x128xf32, #tpu.memory_space<vmem>>, vector<8x128xf32>,
    %184 = arith.addi %13, %c3_i32 : i32
    %185 = vector.broadcast %184 : i32 to vector<8x1xi32>
    %186 = arith.cmpi sgt, %9, %185 : vector<8x1xi32>
    %cst_61 = arith.constant 0.000000e+00 : f32
    %187 = vector.shape_cast %186 : vector<8x1xi1> to vector<8x1xi1>
    %188 = vector.broadcast %187 : vector<8x1xi1> to vector<8x128xi1>
    %189 = vector.broadcast %cst_61 : f32 to vector<8x128xf32>
    %190 = arith.select %188, %182, %189 : vector<8x128xi1>, vector<8x128xf32>
    %191 = arith.truncf %190 : vector<8x128xf32> to vector<8x128xbf16>
    %192 = arith.index_cast %151 : i32 to index
    %c0_62 = arith.constant 0 : index
    %193 = vector.load %arg10[%192, %c0_62] : memref<64x128xbf16, #tpu.memory_space<vmem>>, vector<8x128xbf16>
    tpu.vector_store %arg10[%192, %c0_62], %191 {strides = array<i32>} : memref<64x128xbf16, #tpu.memory_space<vmem>>, vector<8x128xbf16>,
    %c4_i32 = arith.constant 4 : i32
    %c0_63 = arith.constant 0 : index
    %c0_64 = arith.constant 0 : index
    %194 = vector.load %arg11[%c0_63, %c0_64] : memref<8x128xf32, #tpu.memory_space<vmem>>, vector<8x128xf32>
    %c8_i32_65 = arith.constant 8 : i32
    %195 = arith.muli %c4_i32, %c8_i32_65 : i32
    %196 = tpu.assume_multiple %195, 8 : i32
    %197 = arith.index_cast %196 : i32 to index
    %c0_66 = arith.constant 0 : index
    %198 = vector.load %arg13[%197, %c0_66] : memref<64x384xf32, #tpu.memory_space<vmem>>, vector<8x384xf32>
    %199 = arith.addf %198, %8 : vector<8x384xf32>
    %cst_67 = arith.constant dense<0.000000e+00> : vector<8x384xf32>
    %200 = tpu.matmul %194, %7, %cst_67 {dimension_numbers = #tpu.dot_dimension_numbers<[1], [0], [0], [1], [0, 0, 1, 1], [], []>} : vector<8x128xf32>, vector<128x384xf32>, vector<8x384xf32> -> vector<8x384xf32>
    %201 = vector.extract_strided_slice %199 {offsets = [0, 0], sizes = [8, 128], strides = [1, 1]} : vector<8x384xf32> to vector<8x128xf32>
    %202 = vector.extract_strided_slice %200 {offsets = [0, 0], sizes = [8, 128], strides = [1, 1]} : vector<8x384xf32> to vector<8x128xf32>
    %203 = arith.addf %201, %202 : vector<8x128xf32>
    %204 = arith.negf %203 : vector<8x128xf32>
    %205 = math.exp %204 : vector<8x128xf32>
    %cst_68 = arith.constant 1.000000e+00 : f32
    %206 = vector.broadcast %cst_68 : f32 to vector<8x128xf32>
    %207 = arith.addf %206, %205 : vector<8x128xf32>
    %208 = arith.divf %206, %207 : vector<8x128xf32>
    %209 = vector.extract_strided_slice %199 {offsets = [0, 128], sizes = [8, 128], strides = [1, 1]} : vector<8x384xf32> to vector<8x128xf32>
    %210 = vector.extract_strided_slice %200 {offsets = [0, 128], sizes = [8, 128], strides = [1, 1]} : vector<8x384xf32> to vector<8x128xf32>
    %211 = arith.addf %209, %210 : vector<8x128xf32>
    %212 = arith.negf %211 : vector<8x128xf32>
    %213 = math.exp %212 : vector<8x128xf32>
    %cst_69 = arith.constant 1.000000e+00 : f32
    %214 = vector.broadcast %cst_69 : f32 to vector<8x128xf32>
    %215 = arith.addf %214, %213 : vector<8x128xf32>
    %216 = arith.divf %214, %215 : vector<8x128xf32>
    %217 = vector.extract_strided_slice %199 {offsets = [0, 256], sizes = [8, 128], strides = [1, 1]} : vector<8x384xf32> to vector<8x128xf32>
    %218 = vector.extract_strided_slice %200 {offsets = [0, 256], sizes = [8, 128], strides = [1, 1]} : vector<8x384xf32> to vector<8x128xf32>
    %219 = arith.addf %218, %12 : vector<8x128xf32>
    %220 = arith.mulf %208, %219 : vector<8x128xf32>
    %221 = arith.addf %217, %220 : vector<8x128xf32>
    %222 = math.tanh %221 : vector<8x128xf32>
    %cst_70 = arith.constant 1.000000e+00 : f32
    %223 = vector.broadcast %cst_70 : f32 to vector<8x128xf32>
    %224 = arith.subf %223, %216 : vector<8x128xf32>
    %225 = arith.mulf %224, %222 : vector<8x128xf32>
    %226 = arith.mulf %216, %194 : vector<8x128xf32>
    %227 = arith.addf %225, %226 : vector<8x128xf32>
    %c0_71 = arith.constant 0 : index
    %c0_72 = arith.constant 0 : index
    %228 = vector.load %arg11[%c0_71, %c0_72] : memref<8x128xf32, #tpu.memory_space<vmem>>, vector<8x128xf32>
    tpu.vector_store %arg11[%c0_71, %c0_72], %227 {strides = array<i32>} : memref<8x128xf32, #tpu.memory_space<vmem>>, vector<8x128xf32>,
    %229 = arith.addi %13, %c4_i32 : i32
    %230 = vector.broadcast %229 : i32 to vector<8x1xi32>
    %231 = arith.cmpi sgt, %9, %230 : vector<8x1xi32>
    %cst_73 = arith.constant 0.000000e+00 : f32
    %232 = vector.shape_cast %231 : vector<8x1xi1> to vector<8x1xi1>
    %233 = vector.broadcast %232 : vector<8x1xi1> to vector<8x128xi1>
    %234 = vector.broadcast %cst_73 : f32 to vector<8x128xf32>
    %235 = arith.select %233, %227, %234 : vector<8x128xi1>, vector<8x128xf32>
    %236 = arith.truncf %235 : vector<8x128xf32> to vector<8x128xbf16>
    %237 = arith.index_cast %196 : i32 to index
    %c0_74 = arith.constant 0 : index
    %238 = vector.load %arg10[%237, %c0_74] : memref<64x128xbf16, #tpu.memory_space<vmem>>, vector<8x128xbf16>
    tpu.vector_store %arg10[%237, %c0_74], %236 {strides = array<i32>} : memref<64x128xbf16, #tpu.memory_space<vmem>>, vector<8x128xbf16>,
    %c5_i32 = arith.constant 5 : i32
    %c0_75 = arith.constant 0 : index
    %c0_76 = arith.constant 0 : index
    %239 = vector.load %arg11[%c0_75, %c0_76] : memref<8x128xf32, #tpu.memory_space<vmem>>, vector<8x128xf32>
    %c8_i32_77 = arith.constant 8 : i32
    %240 = arith.muli %c5_i32, %c8_i32_77 : i32
    %241 = tpu.assume_multiple %240, 8 : i32
    %242 = arith.index_cast %241 : i32 to index
    %c0_78 = arith.constant 0 : index
    %243 = vector.load %arg13[%242, %c0_78] : memref<64x384xf32, #tpu.memory_space<vmem>>, vector<8x384xf32>
    %244 = arith.addf %243, %8 : vector<8x384xf32>
    %cst_79 = arith.constant dense<0.000000e+00> : vector<8x384xf32>
    %245 = tpu.matmul %239, %7, %cst_79 {dimension_numbers = #tpu.dot_dimension_numbers<[1], [0], [0], [1], [0, 0, 1, 1], [], []>} : vector<8x128xf32>, vector<128x384xf32>, vector<8x384xf32> -> vector<8x384xf32>
    %246 = vector.extract_strided_slice %244 {offsets = [0, 0], sizes = [8, 128], strides = [1, 1]} : vector<8x384xf32> to vector<8x128xf32>
    %247 = vector.extract_strided_slice %245 {offsets = [0, 0], sizes = [8, 128], strides = [1, 1]} : vector<8x384xf32> to vector<8x128xf32>
    %248 = arith.addf %246, %247 : vector<8x128xf32>
    %249 = arith.negf %248 : vector<8x128xf32>
    %250 = math.exp %249 : vector<8x128xf32>
    %cst_80 = arith.constant 1.000000e+00 : f32
    %251 = vector.broadcast %cst_80 : f32 to vector<8x128xf32>
    %252 = arith.addf %251, %250 : vector<8x128xf32>
    %253 = arith.divf %251, %252 : vector<8x128xf32>
    %254 = vector.extract_strided_slice %244 {offsets = [0, 128], sizes = [8, 128], strides = [1, 1]} : vector<8x384xf32> to vector<8x128xf32>
    %255 = vector.extract_strided_slice %245 {offsets = [0, 128], sizes = [8, 128], strides = [1, 1]} : vector<8x384xf32> to vector<8x128xf32>
    %256 = arith.addf %254, %255 : vector<8x128xf32>
    %257 = arith.negf %256 : vector<8x128xf32>
    %258 = math.exp %257 : vector<8x128xf32>
    %cst_81 = arith.constant 1.000000e+00 : f32
    %259 = vector.broadcast %cst_81 : f32 to vector<8x128xf32>
    %260 = arith.addf %259, %258 : vector<8x128xf32>
    %261 = arith.divf %259, %260 : vector<8x128xf32>
    %262 = vector.extract_strided_slice %244 {offsets = [0, 256], sizes = [8, 128], strides = [1, 1]} : vector<8x384xf32> to vector<8x128xf32>
    %263 = vector.extract_strided_slice %245 {offsets = [0, 256], sizes = [8, 128], strides = [1, 1]} : vector<8x384xf32> to vector<8x128xf32>
    %264 = arith.addf %263, %12 : vector<8x128xf32>
    %265 = arith.mulf %253, %264 : vector<8x128xf32>
    %266 = arith.addf %262, %265 : vector<8x128xf32>
    %267 = math.tanh %266 : vector<8x128xf32>
    %cst_82 = arith.constant 1.000000e+00 : f32
    %268 = vector.broadcast %cst_82 : f32 to vector<8x128xf32>
    %269 = arith.subf %268, %261 : vector<8x128xf32>
    %270 = arith.mulf %269, %267 : vector<8x128xf32>
    %271 = arith.mulf %261, %239 : vector<8x128xf32>
    %272 = arith.addf %270, %271 : vector<8x128xf32>
    %c0_83 = arith.constant 0 : index
    %c0_84 = arith.constant 0 : index
    %273 = vector.load %arg11[%c0_83, %c0_84] : memref<8x128xf32, #tpu.memory_space<vmem>>, vector<8x128xf32>
    tpu.vector_store %arg11[%c0_83, %c0_84], %272 {strides = array<i32>} : memref<8x128xf32, #tpu.memory_space<vmem>>, vector<8x128xf32>,
    %274 = arith.addi %13, %c5_i32 : i32
    %275 = vector.broadcast %274 : i32 to vector<8x1xi32>
    %276 = arith.cmpi sgt, %9, %275 : vector<8x1xi32>
    %cst_85 = arith.constant 0.000000e+00 : f32
    %277 = vector.shape_cast %276 : vector<8x1xi1> to vector<8x1xi1>
    %278 = vector.broadcast %277 : vector<8x1xi1> to vector<8x128xi1>
    %279 = vector.broadcast %cst_85 : f32 to vector<8x128xf32>
    %280 = arith.select %278, %272, %279 : vector<8x128xi1>, vector<8x128xf32>
    %281 = arith.truncf %280 : vector<8x128xf32> to vector<8x128xbf16>
    %282 = arith.index_cast %241 : i32 to index
    %c0_86 = arith.constant 0 : index
    %283 = vector.load %arg10[%282, %c0_86] : memref<64x128xbf16, #tpu.memory_space<vmem>>, vector<8x128xbf16>
    tpu.vector_store %arg10[%282, %c0_86], %281 {strides = array<i32>} : memref<64x128xbf16, #tpu.memory_space<vmem>>, vector<8x128xbf16>,
    %c6_i32 = arith.constant 6 : i32
    %c0_87 = arith.constant 0 : index
    %c0_88 = arith.constant 0 : index
    %284 = vector.load %arg11[%c0_87, %c0_88] : memref<8x128xf32, #tpu.memory_space<vmem>>, vector<8x128xf32>
    %c8_i32_89 = arith.constant 8 : i32
    %285 = arith.muli %c6_i32, %c8_i32_89 : i32
    %286 = tpu.assume_multiple %285, 8 : i32
    %287 = arith.index_cast %286 : i32 to index
    %c0_90 = arith.constant 0 : index
    %288 = vector.load %arg13[%287, %c0_90] : memref<64x384xf32, #tpu.memory_space<vmem>>, vector<8x384xf32>
    %289 = arith.addf %288, %8 : vector<8x384xf32>
    %cst_91 = arith.constant dense<0.000000e+00> : vector<8x384xf32>
    %290 = tpu.matmul %284, %7, %cst_91 {dimension_numbers = #tpu.dot_dimension_numbers<[1], [0], [0], [1], [0, 0, 1, 1], [], []>} : vector<8x128xf32>, vector<128x384xf32>, vector<8x384xf32> -> vector<8x384xf32>
    %291 = vector.extract_strided_slice %289 {offsets = [0, 0], sizes = [8, 128], strides = [1, 1]} : vector<8x384xf32> to vector<8x128xf32>
    %292 = vector.extract_strided_slice %290 {offsets = [0, 0], sizes = [8, 128], strides = [1, 1]} : vector<8x384xf32> to vector<8x128xf32>
    %293 = arith.addf %291, %292 : vector<8x128xf32>
    %294 = arith.negf %293 : vector<8x128xf32>
    %295 = math.exp %294 : vector<8x128xf32>
    %cst_92 = arith.constant 1.000000e+00 : f32
    %296 = vector.broadcast %cst_92 : f32 to vector<8x128xf32>
    %297 = arith.addf %296, %295 : vector<8x128xf32>
    %298 = arith.divf %296, %297 : vector<8x128xf32>
    %299 = vector.extract_strided_slice %289 {offsets = [0, 128], sizes = [8, 128], strides = [1, 1]} : vector<8x384xf32> to vector<8x128xf32>
    %300 = vector.extract_strided_slice %290 {offsets = [0, 128], sizes = [8, 128], strides = [1, 1]} : vector<8x384xf32> to vector<8x128xf32>
    %301 = arith.addf %299, %300 : vector<8x128xf32>
    %302 = arith.negf %301 : vector<8x128xf32>
    %303 = math.exp %302 : vector<8x128xf32>
    %cst_93 = arith.constant 1.000000e+00 : f32
    %304 = vector.broadcast %cst_93 : f32 to vector<8x128xf32>
    %305 = arith.addf %304, %303 : vector<8x128xf32>
    %306 = arith.divf %304, %305 : vector<8x128xf32>
    %307 = vector.extract_strided_slice %289 {offsets = [0, 256], sizes = [8, 128], strides = [1, 1]} : vector<8x384xf32> to vector<8x128xf32>
    %308 = vector.extract_strided_slice %290 {offsets = [0, 256], sizes = [8, 128], strides = [1, 1]} : vector<8x384xf32> to vector<8x128xf32>
    %309 = arith.addf %308, %12 : vector<8x128xf32>
    %310 = arith.mulf %298, %309 : vector<8x128xf32>
    %311 = arith.addf %307, %310 : vector<8x128xf32>
    %312 = math.tanh %311 : vector<8x128xf32>
    %cst_94 = arith.constant 1.000000e+00 : f32
    %313 = vector.broadcast %cst_94 : f32 to vector<8x128xf32>
    %314 = arith.subf %313, %306 : vector<8x128xf32>
    %315 = arith.mulf %314, %312 : vector<8x128xf32>
    %316 = arith.mulf %306, %284 : vector<8x128xf32>
    %317 = arith.addf %315, %316 : vector<8x128xf32>
    %c0_95 = arith.constant 0 : index
    %c0_96 = arith.constant 0 : index
    %318 = vector.load %arg11[%c0_95, %c0_96] : memref<8x128xf32, #tpu.memory_space<vmem>>, vector<8x128xf32>
    tpu.vector_store %arg11[%c0_95, %c0_96], %317 {strides = array<i32>} : memref<8x128xf32, #tpu.memory_space<vmem>>, vector<8x128xf32>,
    %319 = arith.addi %13, %c6_i32 : i32
    %320 = vector.broadcast %319 : i32 to vector<8x1xi32>
    %321 = arith.cmpi sgt, %9, %320 : vector<8x1xi32>
    %cst_97 = arith.constant 0.000000e+00 : f32
    %322 = vector.shape_cast %321 : vector<8x1xi1> to vector<8x1xi1>
    %323 = vector.broadcast %322 : vector<8x1xi1> to vector<8x128xi1>
    %324 = vector.broadcast %cst_97 : f32 to vector<8x128xf32>
    %325 = arith.select %323, %317, %324 : vector<8x128xi1>, vector<8x128xf32>
    %326 = arith.truncf %325 : vector<8x128xf32> to vector<8x128xbf16>
    %327 = arith.index_cast %286 : i32 to index
    %c0_98 = arith.constant 0 : index
    %328 = vector.load %arg10[%327, %c0_98] : memref<64x128xbf16, #tpu.memory_space<vmem>>, vector<8x128xbf16>
    tpu.vector_store %arg10[%327, %c0_98], %326 {strides = array<i32>} : memref<64x128xbf16, #tpu.memory_space<vmem>>, vector<8x128xbf16>,
    %c7_i32 = arith.constant 7 : i32
    %c0_99 = arith.constant 0 : index
    %c0_100 = arith.constant 0 : index
    %329 = vector.load %arg11[%c0_99, %c0_100] : memref<8x128xf32, #tpu.memory_space<vmem>>, vector<8x128xf32>
    %c8_i32_101 = arith.constant 8 : i32
    %330 = arith.muli %c7_i32, %c8_i32_101 : i32
    %331 = tpu.assume_multiple %330, 8 : i32
    %332 = arith.index_cast %331 : i32 to index
    %c0_102 = arith.constant 0 : index
    %333 = vector.load %arg13[%332, %c0_102] : memref<64x384xf32, #tpu.memory_space<vmem>>, vector<8x384xf32>
    %334 = arith.addf %333, %8 : vector<8x384xf32>
    %cst_103 = arith.constant dense<0.000000e+00> : vector<8x384xf32>
    %335 = tpu.matmul %329, %7, %cst_103 {dimension_numbers = #tpu.dot_dimension_numbers<[1], [0], [0], [1], [0, 0, 1, 1], [], []>} : vector<8x128xf32>, vector<128x384xf32>, vector<8x384xf32> -> vector<8x384xf32>
    %336 = vector.extract_strided_slice %334 {offsets = [0, 0], sizes = [8, 128], strides = [1, 1]} : vector<8x384xf32> to vector<8x128xf32>
    %337 = vector.extract_strided_slice %335 {offsets = [0, 0], sizes = [8, 128], strides = [1, 1]} : vector<8x384xf32> to vector<8x128xf32>
    %338 = arith.addf %336, %337 : vector<8x128xf32>
    %339 = arith.negf %338 : vector<8x128xf32>
    %340 = math.exp %339 : vector<8x128xf32>
    %cst_104 = arith.constant 1.000000e+00 : f32
    %341 = vector.broadcast %cst_104 : f32 to vector<8x128xf32>
    %342 = arith.addf %341, %340 : vector<8x128xf32>
    %343 = arith.divf %341, %342 : vector<8x128xf32>
    %344 = vector.extract_strided_slice %334 {offsets = [0, 128], sizes = [8, 128], strides = [1, 1]} : vector<8x384xf32> to vector<8x128xf32>
    %345 = vector.extract_strided_slice %335 {offsets = [0, 128], sizes = [8, 128], strides = [1, 1]} : vector<8x384xf32> to vector<8x128xf32>
    %346 = arith.addf %344, %345 : vector<8x128xf32>
    %347 = arith.negf %346 : vector<8x128xf32>
    %348 = math.exp %347 : vector<8x128xf32>
    %cst_105 = arith.constant 1.000000e+00 : f32
    %349 = vector.broadcast %cst_105 : f32 to vector<8x128xf32>
    %350 = arith.addf %349, %348 : vector<8x128xf32>
    %351 = arith.divf %349, %350 : vector<8x128xf32>
    %352 = vector.extract_strided_slice %334 {offsets = [0, 256], sizes = [8, 128], strides = [1, 1]} : vector<8x384xf32> to vector<8x128xf32>
    %353 = vector.extract_strided_slice %335 {offsets = [0, 256], sizes = [8, 128], strides = [1, 1]} : vector<8x384xf32> to vector<8x128xf32>
    %354 = arith.addf %353, %12 : vector<8x128xf32>
    %355 = arith.mulf %343, %354 : vector<8x128xf32>
    %356 = arith.addf %352, %355 : vector<8x128xf32>
    %357 = math.tanh %356 : vector<8x128xf32>
    %cst_106 = arith.constant 1.000000e+00 : f32
    %358 = vector.broadcast %cst_106 : f32 to vector<8x128xf32>
    %359 = arith.subf %358, %351 : vector<8x128xf32>
    %360 = arith.mulf %359, %357 : vector<8x128xf32>
    %361 = arith.mulf %351, %329 : vector<8x128xf32>
    %362 = arith.addf %360, %361 : vector<8x128xf32>
    %c0_107 = arith.constant 0 : index
    %c0_108 = arith.constant 0 : index
    %363 = vector.load %arg11[%c0_107, %c0_108] : memref<8x128xf32, #tpu.memory_space<vmem>>, vector<8x128xf32>
    tpu.vector_store %arg11[%c0_107, %c0_108], %362 {strides = array<i32>} : memref<8x128xf32, #tpu.memory_space<vmem>>, vector<8x128xf32>,
    %364 = arith.addi %13, %c7_i32 : i32
    %365 = vector.broadcast %364 : i32 to vector<8x1xi32>
    %366 = arith.cmpi sgt, %9, %365 : vector<8x1xi32>
    %cst_109 = arith.constant 0.000000e+00 : f32
    %367 = vector.shape_cast %366 : vector<8x1xi1> to vector<8x1xi1>
    %368 = vector.broadcast %367 : vector<8x1xi1> to vector<8x128xi1>
    %369 = vector.broadcast %cst_109 : f32 to vector<8x128xf32>
    %370 = arith.select %368, %362, %369 : vector<8x128xi1>, vector<8x128xf32>
    %371 = arith.truncf %370 : vector<8x128xf32> to vector<8x128xbf16>
    %372 = arith.index_cast %331 : i32 to index
    %c0_110 = arith.constant 0 : index
    %373 = vector.load %arg10[%372, %c0_110] : memref<64x128xbf16, #tpu.memory_space<vmem>>, vector<8x128xbf16>
    tpu.vector_store %arg10[%372, %c0_110], %371 {strides = array<i32>} : memref<64x128xbf16, #tpu.memory_space<vmem>>, vector<8x128xbf16>,
    %c8_i32_111 = arith.constant 8 : i32
    return
  }
  func.func @transform_0(%arg0: i32, %arg1: i32) -> (i32, i32) {
    %c1_i32 = arith.constant 1 : i32
    %0 = arith.muli %arg0, %c1_i32 : i32
    %1 = arith.addi %0, %arg1 : i32
    %c0_i32 = arith.constant 0 : i32
    %c0_i32_0 = arith.constant 0 : i32
    return %1, %c0_i32 : i32, i32
  }
  func.func @transform_1(%arg0: i32, %arg1: i32) -> (i32, i32) {
    %c0_i32 = arith.constant 0 : i32
    %c0_i32_0 = arith.constant 0 : i32
    return %arg0, %c0_i32 : i32, i32
  }
  func.func @transform_2(%arg0: i32, %arg1: i32) -> (i32, i32) {
    %c0_i32 = arith.constant 0 : i32
    %c0_i32_0 = arith.constant 0 : i32
    return %arg0, %c0_i32 : i32, i32
  }
  func.func @transform_3(%arg0: i32, %arg1: i32) -> (i32, i32) {
    %c0_i32 = arith.constant 0 : i32
    %c0_i32_0 = arith.constant 0 : i32
    %c0_i32_1 = arith.constant 0 : i32
    return %c0_i32, %c0_i32_0 : i32, i32
  }
  func.func @transform_4(%arg0: i32, %arg1: i32) -> (i32, i32) {
    %c0_i32 = arith.constant 0 : i32
    %c0_i32_0 = arith.constant 0 : i32
    %c0_i32_1 = arith.constant 0 : i32
    return %c0_i32, %c0_i32_0 : i32, i32
  }
  func.func @transform_5(%arg0: i32, %arg1: i32) -> (i32, i32) {
    %c0_i32 = arith.constant 0 : i32
    %c0_i32_0 = arith.constant 0 : i32
    %c0_i32_1 = arith.constant 0 : i32
    return %c0_i32, %c0_i32_0 : i32, i32
  }
  func.func @transform_6(%arg0: i32, %arg1: i32) -> (i32, i32) {
    %c0_i32 = arith.constant 0 : i32
    %c0_i32_0 = arith.constant 0 : i32
    %c0_i32_1 = arith.constant 0 : i32
    return %c0_i32, %c0_i32_0 : i32, i32
  }
  func.func @transform_7(%arg0: i32, %arg1: i32) -> (i32, i32) {
    %c0_i32 = arith.constant 0 : i32
    %c0_i32_0 = arith.constant 0 : i32
    %c0_i32_1 = arith.constant 0 : i32
    return %c0_i32, %c0_i32_0 : i32, i32
  }
  func.func @transform_8(%arg0: i32, %arg1: i32) -> (i32, i32) {
    %c1_i32 = arith.constant 1 : i32
    %0 = arith.muli %arg0, %c1_i32 : i32
    %1 = arith.addi %0, %arg1 : i32
    %c0_i32 = arith.constant 0 : i32
    %c0_i32_0 = arith.constant 0 : i32
    return %1, %c0_i32 : i32, i32
  }
}

</mosaic_0001>

<bundles_post_ra>
// kernel: decoder_forward.3
= control target key start
LH: loop header
LB: loop body
LE: loop exit
PB: predicated region body
PF: predicated region fallthrough
CT: control target
= control target key end

     0   :  { %s307_s1 = inlined_call_operand.vmem [shape: bf16[128,128], index: 1, kind: input, shape index: {}]   ;;  %s308_s0 = inlined_call_operand.vmem [shape: bf16[64,128], index: 0, kind: input, shape index: {}]   ;;  %s309_s2 = inlined_call_operand.vmem [shape: f32[64,128], index: 2, kind: output, shape index: {}]  }
   0x1   :  { %v207_v0 = vld [vmem:[%s307_s1 + $0x38] sm:$0xff]  ;;  %v206_v1 = vld [vmem:[%s307_s1 + $0x30] sm:$0xff]  ;;  %v205_v2 = vld [vmem:[%s307_s1 + $0x28] sm:$0xff] }
   0x2   :  { %107 = vmatpush.bf16.msra.mxu0 %v207_v0  ;;  %208 = vmatpush.bf16.msra.mxu1 %v207_v0  ;;  %v204_v3 = vld [vmem:[%s307_s1 + $0x20] sm:$0xff]  ;;  %v203_v4 = vld [vmem:[%s307_s1 + $0x18] sm:$0xff]  ;;  %v202_v5 = vld [vmem:[%s307_s1 + $0x10] sm:$0xff] }
   0x3   :  { %209 = vmatpush.bf16.msra.mxu2 %v207_v0  ;;  %210 = vmatpush.bf16.msra.mxu3 %v207_v0  ;;  %v201_v6 = vld [vmem:[%s307_s1 + $0x8] sm:$0xff]  ;;  %v200_v7 = vld [vmem:[%s307_s1] sm:$0xff]  ;;  %v198_v10 = vld [vmem:[%s308_s0 + $0x10] sm:$0xff] }
   0x4   :  { %v196_v8 = vld [vmem:[%s308_s0] sm:$0xff]  ;;  %v197_v9 = vld [vmem:[%s308_s0 + $0x8] sm:$0xff]  ;;  %v199_v11 = vld [vmem:[%s308_s0 + $0x18] sm:$0xff] }
   0x6   :  { %108 = vmatpush.bf16.msra.mxu0 %v206_v1  ;;  %211 = vmatpush.bf16.msra.mxu1 %v206_v1 }
   0x7   :  { %212 = vmatpush.bf16.msra.mxu2 %v206_v1  ;;  %213 = vmatpush.bf16.msra.mxu3 %v206_v1 }
   0xa   :  { %109 = vmatpush.bf16.msra.mxu0 %v205_v2  ;;  %214 = vmatpush.bf16.msra.mxu1 %v205_v2 }
   0xb   :  { %215 = vmatpush.bf16.msra.mxu2 %v205_v2  ;;  %216 = vmatpush.bf16.msra.mxu3 %v205_v2 }
   0xe   :  { %110 = vmatpush.bf16.msra.mxu0 %v204_v3  ;;  %217 = vmatpush.bf16.msra.mxu1 %v204_v3 }
   0xf   :  { %218 = vmatpush.bf16.msra.mxu2 %v204_v3  ;;  %219 = vmatpush.bf16.msra.mxu3 %v204_v3 }
  0x12   :  { %111 = vmatpush.bf16.msra.mxu0 %v203_v4  ;;  %220 = vmatpush.bf16.msra.mxu1 %v203_v4 }
  0x13   :  { %221 = vmatpush.bf16.msra.mxu2 %v203_v4  ;;  %222 = vmatpush.bf16.msra.mxu3 %v203_v4 }
  0x16   :  { %112 = vmatpush.bf16.msra.mxu0 %v202_v5  ;;  %223 = vmatpush.bf16.msra.mxu1 %v202_v5 }
  0x17   :  { %224 = vmatpush.bf16.msra.mxu2 %v202_v5  ;;  %225 = vmatpush.bf16.msra.mxu3 %v202_v5 }
  0x1a   :  { %113 = vmatpush.bf16.msra.mxu0 %v201_v6  ;;  %226 = vmatpush.bf16.msra.mxu1 %v201_v6 }
  0x1b   :  { %227 = vmatpush.bf16.msra.mxu2 %v201_v6  ;;  %228 = vmatpush.bf16.msra.mxu3 %v201_v6 }
  0x1e   :  { %114 = vmatpush.bf16.msra.mxu0 %v200_v7  ;;  %229 = vmatpush.bf16.msra.mxu1 %v200_v7 }
  0x1f   :  { %230 = vmatpush.bf16.msra.mxu2 %v200_v7  ;;  %231 = vmatpush.bf16.msra.mxu3 %v200_v7 }
  0x21   :  { %115 = vmatmul.bf16.vlgmr.msra.gmra.mxu0 %v196_v8  ;;  %120 = vmatmul.bf16.vlgmr.msra.gmra.mxu1 %v197_v9 }
  0x22   :  { %125 = vmatmul.bf16.vlgmr.msra.gmra.mxu2 %v198_v10  ;;  %130 = vmatmul.bf16.vlgmr.msra.gmra.mxu3 %v199_v11 }
  0x9e   :  { %v116_v12 = vpop.f32.mrf.mxu0  ;;  %v121_v13 = vpop.f32.mrf.mxu1 }
  0x9f   :  { %136 = vst [vmem:[%s309_s2] sm:$0xff] %v116_v12 }
  0xa0   :  { %138 = vst [vmem:[%s309_s2 + $0x10] sm:$0xff] %v121_v13 }
  0xa5   :  { %v126_v14 = vpop.f32.mrf.mxu2  ;;  %v131_v15 = vpop.f32.mrf.mxu3 }
  0xa6   :  { %140 = vst [vmem:[%s309_s2 + $0x20] sm:$0xff] %v126_v14  ;;  %v118_v16 = vpop.f32.mrf.mxu0  ;;  %v123_v17 = vpop.f32.mrf.mxu1 }
  0xa7   :  { %142 = vst [vmem:[%s309_s2 + $0x30] sm:$0xff] %v131_v15 }
  0xa8   :  { %137 = vst [vmem:[%s309_s2 + $0x8] sm:$0xff] %v118_v16 }
  0xa9   :  { %139 = vst [vmem:[%s309_s2 + $0x18] sm:$0xff] %v123_v17 }
  0xad   :  { %v128_v18 = vpop.f32.mrf.mxu2  ;;  %v133_v19 = vpop.f32.mrf.mxu3 }
  0xae   :  { %141 = vst [vmem:[%s309_s2 + $0x28] sm:$0xff] %v128_v18 }
  0xaf   :  { %143 = vst [vmem:[%s309_s2 + $0x38] sm:$0xff] %v133_v19 }

// kernel: decoder_forward.2
= control target key start
LH: loop header
LB: loop body
LE: loop exit
PB: predicated region body
PF: predicated region fallthrough
CT: control target
= control target key end

     0   :  { %13 = vsyncpa [#allocation6], 0  ;;  %s1740_s30 = smov [#allocation5]   ;;  %s1741_s10 = smov 384   ;;  %s2928_s0 = inlined_call_operand.vmem [shape: bf16[64,16], index: 0, kind: input, shape index: {}]   ;;  %s2929_s1 = inlined_call_operand.vmem [shape: f32[8,64], index: 1, kind: input, shape index: {}]   ;;  %s2930_s2 = inlined_call_operand.vmem [shape: s32[8,1], index: 2, kind: input, shape index: {}]   ;;  %s2931_s3 = inlined_call_operand.hbm [shape: f32[64,384], index: 3, kind: input, shape index: {}]   ;;  %s2932_s4 = inlined_call_operand.vmem [shape: bf16[16,384], index: 4, kind: input, shape index: {}]   ;;  %s2933_s5 = inlined_call_operand.vmem [shape: f32[1,384], index: 5, kind: input, shape index: {}]   ;;  %s2934_s6 = inlined_call_operand.vmem [shape: f32[128,384], index: 6, kind: input, shape index: {}]   ;;  %s2935_s7 = inlined_call_operand.vmem [shape: f32[1,128], index: 7, kind: input, shape index: {}]   ;;  %s2936_s8 = inlined_call_operand.vmem [shape: bf16[64,128], index: 8, kind: output, shape index: {}]  }
   0x1   :  { %s32_s29 = sshll.u32 %s2931_s3, 4  ;;  %s34_s9 = sshll.u32 %s1740_s30, 4  ;;  %s33_s29 = int_to_ptr.hbm [resolvable:$true] %s32_s29  ;;  %s35_s9 = int_to_ptr.vmem [resolvable:$true] %s34_s9 }
   0x2   :  { %s1742_s11 = smov 24  }
   0x3   :  { %40 = dma.hbm_to_vmem [thread:$0]  %s33_s29, 3072, %s35_s9, [#allocation6], %s1741_s10, %s1741_s10, %s1742_s11  }
   0x4   :  { %1738 = dma.done.wait [#allocation6], 3072  }
   0x5   :  { %1739 = vsyncadd [#allocation6], 4294964224  ;;  %v109_v0 = vld [vmem:[#allocation5 + $0xa8] sm:$0xff]  ;;  %v111_v1 = vld [vmem:[#allocation5 + $0xb8] sm:$0xff]  ;;  %vm235_vm0 = vcmask 130048   ;;  %vm120_vm1 = vcmask 523264  }
   0x6   :  { %v106_v2 = vld [vmem:[#allocation5 + $0x90] sm:$0xff]  ;;  %132 = vmatpush.msra.mxu1 %v109_v0  ;;  %172 = vmatpush.msra.mxu2 %v111_v1  ;;  %v108_v3 = vld [vmem:[#allocation5 + $0xa0] sm:$0xff]  ;;  %v1573_v5 = vld [vmem:[%s2932_s4 + $0x8] sm:$0xf0] }
   0x7   :  { %v1523_v4 = vld [vmem:[%s2932_s4] sm:$0xf]  ;;  %v103_v7 = vld [vmem:[#allocation5 + $0x78] sm:$0xff]  ;;  %v105_v8 = vld [vmem:[#allocation5 + $0x88] sm:$0xff] }
   0x8   :  { %v1524_v6 = vor.u32 %v1573_v5, %v1523_v4  ;;  %133 = vmatpush.msra.mxu1 %v106_v2  ;;  %173 = vmatpush.msra.mxu2 %v108_v3  ;;  %v1802_v9 = vld [vmem:[%s2928_s0] sm:$0xff]  ;;  %v1807_v10 = vld [vmem:[%s2934_s6 + $0x170] sm:$0xff]  ;;  %v1812_v13 = vld [vmem:[%s2934_s6 + $0x158] sm:$0xff] }
   0x9   :  { %v100_v11 = vld [vmem:[#allocation5 + $0x60] sm:$0xff]  ;;  %v102_v12 = vld [vmem:[#allocation5 + $0x70] sm:$0xff]  ;;  %v97_v14 = vld [vmem:[#allocation5 + $0x48] sm:$0xff] }
   0xa   :  { %255 = vmatpush.bf16.msra.mxu3 %v1524_v6  ;;  %134 = vmatpush.msra.mxu1 %v103_v7  ;;  %v99_v15 = vld [vmem:[#allocation5 + $0x58] sm:$0xff]  ;;  %v1820_v16 = vld [vmem:[%s2934_s6 + $0x140] sm:$0xff]  ;;  %v1525_v18 = vld [vmem:[%s2932_s4 + $0xc] sm:$0xf0] }
   0xb   :  { %174 = vmatpush.msra.mxu2 %v105_v8  ;;  %v1572_v17 = vld [vmem:[%s2932_s4 + $0x4] sm:$0xf]  ;;  %v94_v19 = vld [vmem:[#allocation5 + $0x30] sm:$0xff]  ;;  %v1832_v22 = vld [vmem:[%s2934_s6 + $0x128] sm:$0xff]  ;;  %v1743_v8 = vmov 0.0  }
   0xc   :  { %135 = vmatpush.msra.mxu1 %v100_v11  ;;  %v1528_v20 = vor.u32 %v1572_v17, %v1525_v18  ;;  %v96_v21 = vld [vmem:[#allocation5 + $0x40] sm:$0xff]  ;;  %v91_v23 = vld [vmem:[#allocation5 + $0x18] sm:$0xff]  ;;  %v93_v24 = vld [vmem:[#allocation5 + $0x28] sm:$0xff]  ;;  %v2937_v18 = vmov 0  }
   0xd   :  { %1533 = vmatmul.msk.bf16.vlgmr.msra.gmra.mxu3 %vm235_vm0, %v1802_v9  ;;  %175 = vmatpush.msra.mxu2 %v102_v12  ;;  %v88_v25 = vld [vmem:[#allocation5] sm:$0xff]  ;;  %v1838_v26 = vld [vmem:[%s2934_s6 + $0x168] sm:$0xff]  ;;  %v1844_v27 = vld [vmem:[%s2934_s6 + $0x110] sm:$0xff] }
   0xe   :  { %446 = vmatpush.msrb.mxu3 %v1807_v10  ;;  %136 = vmatpush.msra.mxu1 %v97_v14  ;;  %v90_v28 = vld [vmem:[#allocation5 + $0x10] sm:$0xff]  ;;  %v1849_v29 = vld [vmem:[%s2929_s1] sm:$0xff]  ;;  %v1858_v31 = vld [vmem:[%s2934_s6 + $0xf8] sm:$0xff] }
   0xf   :  { %176 = vmatpush.msra.mxu2 %v99_v15  ;;  %284 = vmatpush.bf16.msra.mxu0 %v1528_v20  ;;  %v110_v30 = vld [vmem:[#allocation5 + $0xb0] sm:$0xff]  ;;  %v107_v32 = vld [vmem:[#allocation5 + $0x98] sm:$0xff]  ;;  %v1871_v34 = vld [vmem:[%s2934_s6 + $0xe0] sm:$0xff] }
  0x10   :  { %447 = vmatpush.msrb.mxu3 %v1812_v13  ;;  %137 = vmatpush.msra.mxu1 %v94_v19  ;;  %v1865_v33 = vld [vmem:[%s2934_s6 + $0x150] sm:$0xff]  ;;  %v104_v35 = vld [vmem:[#allocation5 + $0x80] sm:$0xff]  ;;  %v1876_v36 = vld [vmem:[%s2934_s6 + $0x138] sm:$0xff] }
  0x11   :  { %177 = vmatpush.msra.mxu2 %v96_v21  ;;  %v1885_v37 = vld [vmem:[%s2928_s0 + $0x8] sm:$0xff]  ;;  %v1898_v40 = vld [vmem:[%s2934_s6 + $0x120] sm:$0xff]  ;;  %v1903_v41 = vld [vmem:[%s2934_s6 + $0xb0] sm:$0xff]  ;;  %1580 = vset.pattern.permute.xlu0 %v2937_v18 }
  0x12   :  { %448 = vmatpush.msrb.mxu3 %v1820_v16  ;;  %138 = vmatpush.msra.mxu1 %v91_v23  ;;  %v1890_v38 = vld [vmem:[%s2934_s6 + $0xc8] sm:$0xff]  ;;  %v98_v42 = vld [vmem:[#allocation5 + $0x50] sm:$0xff]  ;;  %v1917_v44 = vld [vmem:[%s2934_s6 + $0x98] sm:$0xff] }
  0x13   :  { %555 = vmatpush.msrb.mxu0 %v1838_v26  ;;  %178 = vmatpush.msra.mxu2 %v93_v24  ;;  %v101_v39 = vld [vmem:[#allocation5 + $0x68] sm:$0xff]  ;;  %v95_v45 = vld [vmem:[#allocation5 + $0x38] sm:$0xff]  ;;  %v1924_v46 = vld [vmem:[%s2934_s6 + $0xf0] sm:$0xff] }
  0x14   :  { %449 = vmatpush.msrb.mxu3 %v1832_v22  ;;  %1537 = vmatmul.msk.bf16.vlgmr.msra.gmra.mxu0 %vm235_vm0, %v1802_v9  ;;  %v1912_v43 = vld [vmem:[%s2934_s6 + $0x108] sm:$0xff]  ;;  %v1929_v47 = vld [vmem:[%s2934_s6 + $0x80] sm:$0xff]  ;;  %v1574_v50 = vld [vmem:[%s2932_s4 + $0x10] sm:$0xf0] }
  0x15   :  { %139 = vmatpush.msra.mxu1 %v88_v25  ;;  %179 = vmatpush.msra.mxu2 %v90_v28  ;;  %v92_v48 = vld [vmem:[#allocation5 + $0x20] sm:$0xff]  ;;  %v1531_v49 = vld [vmem:[%s2932_s4 + $0x8] sm:$0xf]  ;;  %v1943_v51 = vld [vmem:[%s2934_s6 + $0xd8] sm:$0xff] }
  0x16   :  { %450 = vmatpush.msrb.mxu3 %v1844_v27  ;;  %1502 = vmatmul.msk.f32.vlgmr.msra.gmra.mxu1 %vm120_vm1, %v1849_v29  ;;  %v89_v52 = vld [vmem:[#allocation5 + $0x8] sm:$0xff]  ;;  %v1956_v54 = vld [vmem:[%s2934_s6 + $0xc0] sm:$0xff]  ;;  %v1532_v55 = vor.u32 %v1574_v50, %v1531_v49  ;;  %v1965_v56 = vld [vmem:[%s2934_s6 + $0x50] sm:$0xff] }
  0x17   :  { %152 = vmatpush.msrb.mxu1 %v110_v30  ;;  %426 = vmatpush.msrb.mxu2 %v1838_v26  ;;  %v1951_v53 = vld [vmem:[%s2934_s6 + $0x68] sm:$0xff]  ;;  %v1979_v58 = vld [vmem:[%s2934_s6 + $0x38] sm:$0xff]  ;;  %v1984_v59 = vld [vmem:[%s2934_s6 + $0x90] sm:$0xff] }
  0x18   :  { %451 = vmatpush.msrb.mxu3 %v1858_v31  ;;  %1504 = vmatmul.msk.f32.vlgmr.msra.gmra.mxu2 %vm120_vm1, %v1849_v29  ;;  %v1970_v57 = vld [vmem:[%s2934_s6 + $0xa8] sm:$0xff]  ;;  %2958 = vst [vmem:[#allocation8_spill] sm:$0xff] %v1979_v58  ;;  %v1991_v60 = vld [vmem:[%s2934_s6 + $0x20] sm:$0xff]  ;;  %v1997_v61 = vld [vmem:[%s2934_s6 + $0x78] sm:$0xff] }
  0x19   :  { %153 = vmatpush.msrb.mxu1 %v107_v32  ;;  %427 = vmatpush.msrb.mxu2 %v1865_v33  ;;  %2959 = vst [vmem:[#allocation9_spill] sm:$0xff] %v1991_v60  ;;  %v2002_v62 = vld [vmem:[%s2928_s0 + $0x10] sm:$0xff]  ;;  %v2011_v63 = vld [vmem:[%s2934_s6 + $0x60] sm:$0xff]  ;;  %v2019_v0 = vld [vmem:[%s2934_s6 + $0x8] sm:$0xff] }
  0x1a   :  { %452 = vmatpush.msrb.mxu3 %v1871_v34  ;;  %556 = vmatpush.msrb.mxu0 %v1865_v33  ;;  %2960 = vst [vmem:[#allocation10_spill] sm:$0xff] %v2019_v0  ;;  %v2027_v1 = vld [vmem:[%s2934_s6 + $0x48] sm:$0xff]  ;;  %v2036_v2 = vld [vmem:[%s2934_s6 + $0x30] sm:$0xff]  ;;  %v2041_v3 = vld [vmem:[%s2934_s6 + $0x178] sm:$0xff] }
  0x1b   :  { %154 = vmatpush.msrb.mxu1 %v104_v35  ;;  %428 = vmatpush.msrb.mxu2 %v1876_v36  ;;  %v2050_v4 = vld [vmem:[%s2934_s6 + $0x18] sm:$0xff]  ;;  %v2055_v5 = vld [vmem:[%s2934_s6 + $0x160] sm:$0xff]  ;;  %v2074_v7 = vld [vmem:[%s2934_s6 + $0x148] sm:$0xff] }
  0x1c   :  { %453 = vmatpush.msrb.mxu3 %v1890_v38  ;;  %557 = vmatpush.msrb.mxu0 %v1876_v36  ;;  %2961 = vst [vmem:[#allocation11_spill] sm:$0xff] %v2050_v4  ;;  %v2064_v6 = vld [vmem:[%s2934_s6] sm:$0xff]  ;;  %v2092_v11 = vld [vmem:[%s2928_s0 + $0x18] sm:$0xff]  ;;  %v2121_v15 = vld [vmem:[%s2934_s6 + $0xe8] sm:$0xff] }
  0x1d   :  { %155 = vmatpush.msrb.mxu1 %v101_v39  ;;  %1534 = vmatmul.msk.bf16.gmra.mxu3 %vm235_vm0, %v1885_v37  ;;  %2962 = vst [vmem:[#allocation12_spill] sm:$0xff] %v2064_v6  ;;  %v2097_v12 = vld [vmem:[%s2934_s6 + $0x118] sm:$0xff]  ;;  %v2106_v14 = vld [vmem:[%s2934_s6 + $0x100] sm:$0xff]  ;;  %v2135_v19 = vld [vmem:[%s2934_s6 + $0xd0] sm:$0xff] }
  0x1e   :  { %429 = vmatpush.msrb.mxu2 %v1898_v40  ;;  %454 = vmatpush.msrb.mxu3 %v1903_v41  ;;  %v2126_v17 = vld [vmem:[%s2930_s2] sm:$0xff]  ;;  %v2144_v21 = vld [vmem:[%s2934_s6 + $0xb8] sm:$0xff]  ;;  %v2163_v24 = vld [vmem:[%s2934_s6 + $0x88] sm:$0xff] }
  0x1f   :  { %156 = vmatpush.msrb.mxu1 %v98_v42  ;;  %558 = vmatpush.msrb.mxu0 %v1898_v40  ;;  %2963 = vst [vmem:[#allocation13_spill] sm:$0xff] %v2126_v17  ;;  %vm536_vm2 = vcmp.gt.s32.totalorder %v2126_v17, 0  ;;  %v2153_v23 = vld [vmem:[%s2934_s6 + $0xa0] sm:$0xff]  ;;  %v2172_v25 = vld [vmem:[%s2934_s6 + $0x70] sm:$0xff]  ;;  %v2181_v28 = vld [vmem:[%s2934_s6 + $0x58] sm:$0xff]  ;;  %vm666_vm3 = vcmp.gt.s32.totalorder %v2126_v17, 1 }
  0x20   :  { %430 = vmatpush.msrb.mxu2 %v1912_v43  ;;  %455 = vmatpush.msrb.mxu3 %v1917_v44  ;;  %v537_v20 = vsel %vm536_vm2, 1, %v2937_v18  ;;  %v2204_v30 = vld [vmem:[%s2934_s6 + $0x28] sm:$0xff]  ;;  %v2213_v32 = vld [vmem:[%s2934_s6 + $0x10] sm:$0xff] }
  0x21   :  { %157 = vmatpush.msrb.mxu1 %v95_v45  ;;  %559 = vmatpush.msrb.mxu0 %v1912_v43  ;;  %2964 = vst [vmem:[#allocation14_spill] sm:$0xff] %v2204_v30 }
  0x22   :  { %431 = vmatpush.msrb.mxu2 %v1924_v46  ;;  %456 = vmatpush.msrb.mxu3 %v1929_v47  ;;  %2965 = vst [vmem:[#allocation15_spill] sm:$0xff] %v2213_v32 }
  0x23   :  { %158 = vmatpush.msrb.mxu1 %v92_v48  ;;  %560 = vmatpush.msrb.mxu0 %v1924_v46 }
  0x24   :  { %432 = vmatpush.msrb.mxu2 %v1943_v51  ;;  %1538 = vmatmul.msk.bf16.gmra.mxu0 %vm235_vm0, %v1885_v37 }
  0x25   :  { %159 = vmatpush.msrb.mxu1 %v89_v52  ;;  %457 = vmatpush.msrb.mxu3 %v1951_v53 }
  0x26   :  { %433 = vmatpush.msrb.mxu2 %v1956_v54  ;;  %1503 = vmatmul.msk.f32.vlgmr.msrb.gmra.mxu1 %vm120_vm1, %v1849_v29  ;;  %v2196_v29 = vld [vmem:[%s2934_s6 + $0x40] sm:$0xff] }
  0x27   :  { %313 = vmatpush.bf16.msra.mxu1 %v1532_v55  ;;  %458 = vmatpush.msrb.mxu3 %v1965_v56 }
  0x28   :  { %434 = vmatpush.msrb.mxu2 %v1970_v57  ;;  %561 = vmatpush.msrb.mxu0 %v1943_v51 }
  0x29   :  { %459 = vmatpush.msrb.mxu3 %v1979_v58  ;;  %539 = vperm.xlu0 %1580, %v537_v20  }
  0x2a   :  { %435 = vmatpush.msrb.mxu2 %v1984_v59  ;;  %562 = vmatpush.msrb.mxu0 %v1956_v54 }
  0x2b   :  { %575 = vmatpush.msrb.mxu1 %v1807_v10  ;;  %460 = vmatpush.msrb.mxu3 %v1991_v60 }
  0x2c   :  { %436 = vmatpush.msrb.mxu2 %v1997_v61  ;;  %563 = vmatpush.msrb.mxu0 %v1970_v57 }
  0x2d   :  { %576 = vmatpush.msrb.mxu1 %v1812_v13  ;;  %1535 = vmatmul.msk.bf16.gmra.mxu3 %vm235_vm0, %v2002_v62 }
  0x2e   :  { %437 = vmatpush.msrb.mxu2 %v2011_v63  ;;  %1541 = vmatmul.msk.bf16.vlgmr.msra.gmra.mxu1 %vm235_vm0, %v1802_v9  ;;  %v2084_v9 = vld [vmem:[%s2934_s6 + $0x130] sm:$0xff] }
  0x2f   :  { %577 = vmatpush.msrb.mxu1 %v1820_v16  ;;  %461 = vmatpush.msrb.mxu3 %v2019_v0 }
  0x30   :  { %438 = vmatpush.msrb.mxu2 %v2027_v1  ;;  %564 = vmatpush.msrb.mxu0 %v1984_v59 }
  0x31   :  { %578 = vmatpush.msrb.mxu1 %v1832_v22  ;;  %595 = vmatpush.msra.mxu3 %v2041_v3 }
  0x32   :  { %439 = vmatpush.msrb.mxu2 %v2036_v2  ;;  %565 = vmatpush.msrb.mxu0 %v1997_v61 }
  0x33   :  { %579 = vmatpush.msrb.mxu1 %v1844_v27  ;;  %596 = vmatpush.msra.mxu3 %v2055_v5 }
  0x34   :  { %440 = vmatpush.msrb.mxu2 %v2050_v4  ;;  %1539 = vmatmul.msk.bf16.gmra.mxu0 %vm235_vm0, %v2002_v62 }
  0x35   :  { %580 = vmatpush.msrb.mxu1 %v1858_v31  ;;  %597 = vmatpush.msra.mxu3 %v2074_v7 }
  0x36   :  { %441 = vmatpush.msrb.mxu2 %v2064_v6  ;;  %566 = vmatpush.msrb.mxu0 %v2011_v63 }
  0x37   :  { %581 = vmatpush.msrb.mxu1 %v1871_v34  ;;  %442 = vmatmul.f32.vlgmr.msrb.gmra.mxu2 %v1743_v8 }
  0x38   :  { %466 = vmatpush.msra.mxu2 %v2041_v3  ;;  %598 = vmatpush.msra.mxu3 %v2084_v9 }
  0x39   :  { %582 = vmatpush.msrb.mxu1 %v1890_v38  ;;  %567 = vmatpush.msrb.mxu0 %v2027_v1 }
  0x3a   :  { %467 = vmatpush.msra.mxu2 %v2055_v5  ;;  %599 = vmatpush.msra.mxu3 %v2097_v12 }
  0x3b   :  { %583 = vmatpush.msrb.mxu1 %v1903_v41  ;;  %568 = vmatpush.msrb.mxu0 %v2036_v2 }
  0x3c   :  { %468 = vmatpush.msra.mxu2 %v2074_v7  ;;  %600 = vmatpush.msra.mxu3 %v2106_v14 }
  0x3d   :  { %584 = vmatpush.msrb.mxu1 %v1917_v44  ;;  %1536 = vmatmul.msk.bf16.gmra.mxu3 %vm235_vm0, %v2092_v11 }
  0x3e   :  { %469 = vmatpush.msra.mxu2 %v2084_v9  ;;  %1542 = vmatmul.msk.bf16.gmra.mxu1 %vm235_vm0, %v1885_v37  ;;  %v112_v37 = vld [vmem:[%s2933_s5] sm:$0x7] }
  0x3f   :  { %585 = vmatpush.msrb.mxu1 %v1929_v47  ;;  %601 = vmatpush.msra.mxu3 %v2121_v15  ;;  %v114_v42 = vperm.slane %v112_v37, 0 }
  0x40   :  { %470 = vmatpush.msra.mxu2 %v2097_v12  ;;  %569 = vmatpush.msrb.mxu0 %v2050_v4 }
  0x41   :  { %586 = vmatpush.msrb.mxu1 %v1951_v53  ;;  %602 = vmatpush.msra.mxu3 %v2135_v19 }
  0x42   :  { %471 = vmatpush.msra.mxu2 %v2106_v14  ;;  %570 = vmatpush.msrb.mxu0 %v2064_v6 }
  0x43   :  { %603 = vmatpush.msra.mxu3 %v2144_v21  ;;  %587 = vmatpush.msrb.mxu1 %v1965_v56 }
  0x44   :  { %472 = vmatpush.msra.mxu2 %v2121_v15  ;;  %1540 = vmatmul.msk.bf16.gmra.mxu0 %vm235_vm0, %v2092_v11 }
  0x45   :  { %604 = vmatpush.msra.mxu3 %v2153_v23  ;;  %588 = vmatpush.msrb.mxu1 %v1979_v58 }
  0x46   :  { %473 = vmatpush.msra.mxu2 %v2135_v19  ;;  %706 = vmatpush.msra.mxu0 %v1807_v10 }
  0x47   :  { %605 = vmatpush.msra.mxu3 %v2163_v24  ;;  %589 = vmatpush.msrb.mxu1 %v1991_v60 }
  0x48   :  { %474 = vmatpush.msra.mxu2 %v2144_v21  ;;  %707 = vmatpush.msra.mxu0 %v1812_v13 }
  0x49   :  { %606 = vmatpush.msra.mxu3 %v2172_v25  ;;  %590 = vmatpush.msrb.mxu1 %v2019_v0 }
  0x4a   :  { %475 = vmatpush.msra.mxu2 %v2153_v23  ;;  %708 = vmatpush.msra.mxu0 %v1820_v16 }
  0x4b   :  { %726 = vmatpush.msra.mxu1 %v2041_v3  ;;  %607 = vmatpush.msra.mxu3 %v2181_v28 }
  0x4c   :  { %476 = vmatpush.msra.mxu2 %v2163_v24  ;;  %709 = vmatpush.msra.mxu0 %v1832_v22 }
  0x4d   :  { %727 = vmatpush.msra.mxu1 %v2055_v5  ;;  %462 = vmatmul.f32.vlgmr.msrb.gmra.mxu3 %v1743_v8 }
  0x4e   :  { %477 = vmatpush.msra.mxu2 %v2172_v25  ;;  %1543 = vmatmul.msk.bf16.gmra.mxu1 %vm235_vm0, %v2002_v62  ;;  %v115_v62 = vperm.slane %v112_v37, 1 }
  0x4f   :  { %608 = vmatpush.msra.mxu3 %v2196_v29  ;;  %728 = vmatpush.msra.mxu1 %v2074_v7 }
  0x50   :  { %478 = vmatpush.msra.mxu2 %v2181_v28  ;;  %710 = vmatpush.msra.mxu0 %v1844_v27 }
  0x51   :  { %609 = vmatpush.msra.mxu3 %v2204_v30  ;;  %729 = vmatpush.msra.mxu1 %v2084_v9 }
  0x52   :  { %479 = vmatpush.msra.mxu2 %v2196_v29  ;;  %711 = vmatpush.msra.mxu0 %v1858_v31 }
  0x53   :  { %610 = vmatpush.msra.mxu3 %v2213_v32  ;;  %730 = vmatpush.msra.mxu1 %v2097_v12 }
  0x54   :  { %480 = vmatpush.msra.mxu2 %v2204_v30  ;;  %1581 = vset.pattern.permute.xlu1 %v2937_v18 }
  0x55   :  { %731 = vmatpush.msra.mxu1 %v2106_v14  ;;  %712 = vmatpush.msra.mxu0 %v1871_v34 }
  0x56   :  { %481 = vmatpush.msra.mxu2 %v2213_v32  ;;  %817 = vmatpush.msrb.mxu3 %v1838_v26 }
  0x57   :  { %482 = vmatmul.f32.vlgmr.msra.gmra.mxu2 %v1743_v8  ;;  %732 = vmatpush.msra.mxu1 %v2121_v15 }
  0x58   :  { %686 = vmatpush.msrb.mxu2 %v1838_v26  ;;  %713 = vmatpush.msra.mxu0 %v1890_v38 }
  0x59   :  { %733 = vmatpush.msra.mxu1 %v2135_v19  ;;  %818 = vmatpush.msrb.mxu3 %v1865_v33 }
  0x5a   :  { %687 = vmatpush.msrb.mxu2 %v1865_v33  ;;  %714 = vmatpush.msra.mxu0 %v1903_v41 }
  0x5b   :  { %734 = vmatpush.msra.mxu1 %v2144_v21  ;;  %819 = vmatpush.msrb.mxu3 %v1876_v36 }
  0x5c   :  { %688 = vmatpush.msrb.mxu2 %v1876_v36  ;;  %715 = vmatpush.msra.mxu0 %v1917_v44 }
  0x5d   :  { %735 = vmatpush.msra.mxu1 %v2153_v23  ;;  %820 = vmatpush.msrb.mxu3 %v1898_v40 }
  0x5e   :  { %1544 = vmatmul.msk.bf16.gmra.mxu1 %vm235_vm0, %v2092_v11  ;;  %689 = vmatpush.msrb.mxu2 %v1898_v40 }
  0x5f   :  { %716 = vmatpush.msra.mxu0 %v1929_v47  ;;  %736 = vmatpush.msra.mxu1 %v2163_v24 }
  0x60   :  { %690 = vmatpush.msrb.mxu2 %v1912_v43  ;;  %821 = vmatpush.msrb.mxu3 %v1912_v43 }
  0x61   :  { %717 = vmatpush.msra.mxu0 %v1951_v53  ;;  %737 = vmatpush.msra.mxu1 %v2172_v25 }
  0x62   :  { %691 = vmatpush.msrb.mxu2 %v1924_v46  ;;  %822 = vmatpush.msrb.mxu3 %v1924_v46 }
  0x63   :  { %718 = vmatpush.msra.mxu0 %v1965_v56  ;;  %738 = vmatpush.msra.mxu1 %v2181_v28 }
  0x64   :  { %692 = vmatpush.msrb.mxu2 %v1943_v51  ;;  %823 = vmatpush.msrb.mxu3 %v1943_v51 }
  0x65   :  { %719 = vmatpush.msra.mxu0 %v1979_v58  ;;  %739 = vmatpush.msra.mxu1 %v2196_v29 }
  0x66   :  { %693 = vmatpush.msrb.mxu2 %v1956_v54  ;;  %824 = vmatpush.msrb.mxu3 %v1956_v54 }
  0x67   :  { %720 = vmatpush.msra.mxu0 %v1991_v60  ;;  %740 = vmatpush.msra.mxu1 %v2204_v30 }
  0x68   :  { %694 = vmatpush.msrb.mxu2 %v1970_v57  ;;  %825 = vmatpush.msrb.mxu3 %v1970_v57 }
  0x69   :  { %721 = vmatpush.msra.mxu0 %v2019_v0  ;;  %741 = vmatpush.msra.mxu1 %v2213_v32 }
  0x6a   :  { %695 = vmatpush.msrb.mxu2 %v1984_v59  ;;  %1582 = vset.pattern.permute.xlu2 %v2937_v18 }
  0x6b   :  { %826 = vmatpush.msrb.mxu3 %v1984_v59 }
  0x6c   :  { %696 = vmatpush.msrb.mxu2 %v1997_v61 }
  0x6d   :  { %827 = vmatpush.msrb.mxu3 %v1997_v61 }
  0x6e   :  { %697 = vmatpush.msrb.mxu2 %v2011_v63 }
  0x6f   :  { %828 = vmatpush.msrb.mxu3 %v2011_v63 }
  0x70   :  { %698 = vmatpush.msrb.mxu2 %v2027_v1 }
  0x71   :  { %829 = vmatpush.msrb.mxu3 %v2027_v1 }
  0x72   :  { %699 = vmatpush.msrb.mxu2 %v2036_v2 }
  0x73   :  { %830 = vmatpush.msrb.mxu3 %v2036_v2 }
  0x74   :  { %700 = vmatpush.msrb.mxu2 %v2050_v4 }
  0x75   :  { %831 = vmatpush.msrb.mxu3 %v2050_v4 }
  0x76   :  { %701 = vmatpush.msrb.mxu2 %v2064_v6 }
  0x77   :  { %832 = vmatpush.msrb.mxu3 %v2064_v6 }
  0x78   :  { %837 = vmatpush.msra.mxu2 %v1807_v10 }
  0x7a   :  { %838 = vmatpush.msra.mxu2 %v1812_v13 }
  0x7c   :  { %839 = vmatpush.msra.mxu2 %v1820_v16 }
  0x7e   :  { %840 = vmatpush.msra.mxu2 %v1832_v22 }
  0x80   :  { %841 = vmatpush.msra.mxu2 %v1844_v27 }
  0x82   :  { %842 = vmatpush.msra.mxu2 %v1858_v31 }
  0x84   :  { %843 = vmatpush.msra.mxu2 %v1871_v34 }
  0x86   :  { %844 = vmatpush.msra.mxu2 %v1890_v38 }
  0x88   :  { %845 = vmatpush.msra.mxu2 %v1903_v41 }
  0x8a   :  { %846 = vmatpush.msra.mxu2 %v1917_v44 }
  0x8c   :  { %847 = vmatpush.msra.mxu2 %v1929_v47 }
  0x8e   :  { %848 = vmatpush.msra.mxu2 %v1951_v53 }
  0x90   :  { %849 = vmatpush.msra.mxu2 %v1965_v56  ;;  %v257_v35 = vpop.f32.mrf.mxu3 }
  0x91   :  { %v286_v39 = vpop.f32.mrf.mxu0 }
  0x92   :  { %850 = vmatpush.msra.mxu2 %v1979_v58 }
  0x93   :  { %v141_v45 = vpop.f32.mrf.mxu1 }
  0x94   :  { %851 = vmatpush.msra.mxu2 %v1991_v60  ;;  %v142_v48 = vadd.f32 %v141_v45, %v114_v42 }
  0x96   :  { %852 = vmatpush.msra.mxu2 %v2019_v0 }
  0x98   :  { %v259_v49 = vpop.f32.mrf.mxu3 }
  0x99   :  { %v2298_v50 = vadd.f32 %v259_v49, %v142_v48  ;;  %v2300_v52 = vpop.f32.mrf.mxu0 }
  0x9a   :  { %2967 = vst [vmem:[#allocation17_spill] sm:$0xff] %v2300_v52 }
  0x9b   :  { %2966 = vst [vmem:[#allocation16_spill] sm:$0xff] %v2298_v50  ;;  %v116_v50 = vperm.slane %v112_v37, 2  ;;  %v181_v52 = vpop.f32.mrf.mxu2 }
  0xa0   :  { %v262_v55 = vpop.f32.mrf.mxu3 }
  0xa1   :  { %v2302_v8 = vadd.f32 %v262_v55, %v142_v48  ;;  %v291_v11 = vpop.f32.mrf.mxu0 }
  0xa3   :  { %2968 = vst [vmem:[#allocation18_spill] sm:$0xff] %v2302_v8  ;;  %v161_v20 = vpop.f32.mrf.mxu1  ;;  %v2316_v8 = vadd.f32 %v181_v52, %v116_v50 }
  0xa4   :  { %v2304_v18 = vadd.f32 %v161_v20, %v115_v62 }
  0xa5   :  { %2973 = vst [vmem:[#allocation23_spill] sm:$0xff] %v2316_v8 }
  0xa6   :  { %2969 = vst [vmem:[#allocation19_spill] sm:$0xff] %v2304_v18  ;;  %v2307_v6 = vadd.f32 %v291_v11, %v2304_v18 }
  0xa8   :  { %2970 = vst [vmem:[#allocation20_spill] sm:$0xff] %v2307_v6  ;;  %v264_v32 = vpop.f32.mrf.mxu3 }
  0xa9   :  { %v2309_v60 = vadd.f32 %v264_v32, %v142_v48  ;;  %v293_v42 = vpop.f32.mrf.mxu0 }
  0xaa   :  { %v2312_v45 = vadd.f32 %v293_v42, %v2304_v18 }
  0xab   :  { %2971 = vst [vmem:[#allocation21_spill] sm:$0xff] %v2309_v60  ;;  %v2314_v49 = vpop.f32.mrf.mxu1 }
  0xac   :  { %2972 = vst [vmem:[#allocation22_spill] sm:$0xff] %v2312_v45  ;;  %v423_v45 = vadd.f32 %v257_v35, %v142_v48  ;;  %v425_v17 = vadd.f32 %v2314_v49, %v2316_v8 }
  0xb0   :  { %v267_v55 = vpop.f32.mrf.mxu3 }
  0xb1   :  { %v2318_v0 = vadd.f32 %v267_v55, %v142_v48  ;;  %v296_v62 = vpop.f32.mrf.mxu0 }
  0xb2   :  { %v2321_v11 = vadd.f32 %v296_v62, %v2304_v18 }
  0xb3   :  { %2974 = vst [vmem:[#allocation24_spill] sm:$0xff] %v2318_v0  ;;  %v317_v20 = vpop.f32.mrf.mxu1 }
  0xb4   :  { %2975 = vst [vmem:[#allocation25_spill] sm:$0xff] %v2321_v11  ;;  %v2324_v32 = vadd.f32 %v317_v20, %v2316_v8 }
  0xb6   :  { %2976 = vst [vmem:[#allocation26_spill] sm:$0xff] %v2324_v32 }
  0xb8   :  { %v269_v60 = vpop.f32.mrf.mxu3 }
  0xb9   :  { %v2326_v42 = vadd.f32 %v269_v60, %v142_v48  ;;  %v298_v6 = vpop.f32.mrf.mxu0 }
  0xba   :  { %v443_v37 = vpop.f32.mrf.mxu2  ;;  %v2329_v4 = vadd.f32 %v298_v6, %v2304_v18 }
  0xbb   :  { %2977 = vst [vmem:[#allocation27_spill] sm:$0xff] %v2326_v42  ;;  %v486_v50 = vadd.f32 %v443_v37, %v423_v45  ;;  %v320_v52 = vpop.f32.mrf.mxu1 }
  0xbc   :  { %2978 = vst [vmem:[#allocation28_spill] sm:$0xff] %v2329_v4  ;;  %v2332_v55 = vadd.f32 %v320_v52, %v2316_v8 }
  0xbd   :  { %v1545_v62 = vmul.f32 -1.442695, %v486_v50 }
  0xbe   :  { %2979 = vst [vmem:[#allocation29_spill] sm:$0xff] %v2332_v55 }
  0xbf   :  { %1584 = vpow2.f32 %v1545_v62 }
  0xc0   :  { %v272_v11 = vpop.f32.mrf.mxu3 }
  0xc1   :  { %v2334_v0 = vadd.f32 %v272_v11, %v142_v48  ;;  %v301_v20 = vpop.f32.mrf.mxu0  ;;  %v424_v11 = vadd.f32 %v286_v39, %v2304_v18  ;;  %v2356_v39 = vld [vmem:[%s2935_s7] ss:$0 sm:$0xff] }
  0xc2   :  { %v2337_v60 = vadd.f32 %v301_v20, %v2304_v18 }
  0xc3   :  { %2980 = vst [vmem:[#allocation30_spill] sm:$0xff] %v2334_v0  ;;  %v322_v35 = vpop.f32.mrf.mxu1 }
  0xc4   :  { %2981 = vst [vmem:[#allocation31_spill] sm:$0xff] %v2337_v60  ;;  %v2340_v42 = vadd.f32 %v322_v35, %v2316_v8 }
  0xc5   :  { %v1585_v6 = vpop.eup %1584 }
  0xc6   :  { %2982 = vst [vmem:[#allocation32_spill] sm:$0xff] %v2340_v42  ;;  %v490_v4 = vadd.f32 1.0, %v1585_v6 }
  0xc8   :  { %1586 = vrcp.f32 %v490_v4  ;;  %v274_v45 = vpop.f32.mrf.mxu3  ;;  %vm496_vm5 = vweird.f32 %v490_v4 }
  0xc9   :  { %v2342_v37 = vadd.f32 %v274_v45, %v142_v48  ;;  %v2986_v48 = vmov 0  }
  0xca   :  { %v667_v45 = vsel %vm666_vm3, 1, %v2986_v48 }
  0xcb   :  { %2983 = vst [vmem:[#allocation33_spill] sm:$0xff] %v2342_v37  ;;  %v325_v52 = vpop.f32.mrf.mxu1  ;;  %669 = vperm.xlu0 %1580, %v667_v45  }
  0xcc   :  { %v2345_v50 = vadd.f32 %v325_v52, %v2316_v8 }
  0xce   :  { %2984 = vst [vmem:[#allocation34_spill] sm:$0xff] %v2345_v50  ;;  %v1587_v62 = vpop.eup %1586 }
  0xcf   :  { %v492_v0 = vmul.f32 %v1587_v62, %v490_v4  ;;  %vm497_vm4 = vweird.f32 %v1587_v62 }
  0xd0   :  { %v463_v20 = vpop.f32.mrf.mxu3  ;;  %vm498_vm6 = vmor %vm496_vm5, %vm497_vm4 }
  0xd1   :  { %v506_v60 = vadd.f32 %v463_v20, %v424_v11  ;;  %v493_v55 = vsub.f32 1.0, %v492_v0  ;;  %v502_v11 = vand.u32 2147483648, %v490_v4 }
  0xd3   :  { %v1546_v32 = vmul.f32 -1.442695, %v506_v60  ;;  %v327_v35 = vpop.f32.mrf.mxu1  ;;  %v494_v6 = vmul.f32 %v1587_v62, %v493_v55  ;;  %v503_v50 = vor.u32 1.1754944e-38, %v502_v11 }
  0xd4   :  { %v2349_v42 = vadd.f32 %v327_v35, %v2316_v8 }
  0xd5   :  { %1588 = vpow2.f32 %v1546_v32  ;;  %v495_v52 = vadd.f32 %v1587_v62, %v494_v6  ;;  %v500_v32 = vand.u32 2147483647, %v490_v4 }
  0xd6   :  { %2985 = vst [vmem:[#allocation35_spill] sm:$0xff] %v2349_v42 }
  0xd7   :  { %v499_v37 = vsel %vm498_vm6, %v1587_v62, %v495_v52  ;;  %vm501_vm7 = vcmp.eq.f32.partialorder %v500_v32, 8.507059e+37 }
  0xd8   :  { %v504_v6 = vsel %vm501_vm7, %v503_v50, %v499_v37  ;;  %v540_v50 = vpop.permute.xlu0 %539 }
  0xd9   :  { %vm541_vm12 = vcmp.eq.s32.totalorder %v540_v50, 1 }
  0xda   :  { %v483_v60 = vpop.f32.mrf.mxu2 }
  0xdb   :  { %v1589_v0 = vpop.eup %1588  ;;  %v330_v20 = vpop.f32.mrf.mxu1  ;;  %v526_v42 = vadd.f32 %v2356_v39, %v483_v60 }
  0xdc   :  { %v510_v35 = vadd.f32 1.0, %v1589_v0  ;;  %v2359_v55 = vadd.f32 %v330_v20, %v2316_v8 }
  0xdd   :  { %v527_v48 = vmul.f32 %v526_v42, %v504_v6  ;;  %v2998_v6 = vld [vmem:[#allocation17_spill] sm:$0xff] }
  0xde   :  { %2987 = vst [vmem:[#allocation36_spill] sm:$0xff] %v2359_v55  ;;  %1590 = vrcp.f32 %v510_v35  ;;  %v522_v4 = vand.u32 2147483648, %v510_v35  ;;  %v520_v20 = vand.u32 2147483647, %v510_v35  ;;  %vm516_vm9 = vweird.f32 %v510_v35 }
  0xdf   :  { %v528_v0 = vadd.f32 %v527_v48, %v425_v17  ;;  %v2994_v48 = vld [vmem:[#allocation10_spill] sm:$0xff] }
  0xe0   :  { %v523_v62 = vor.u32 1.1754944e-38, %v522_v4  ;;  %vm521_vm11 = vcmp.eq.f32.partialorder %v520_v20, 8.507059e+37  ;;  %v2999_v20 = vld [vmem:[#allocation16_spill] sm:$0xff] }
  0xe1   :  { %1592 = vtanh.f32 %v528_v0 }
  0xe3   :  { %v2423_v32 = vpop.f32.mrf.mxu1 }
  0xe4   :  { %v1591_v45 = vpop.eup %1590 }
  0xe5   :  { %v512_v18 = vmul.f32 %v1591_v45, %v510_v35  ;;  %vm517_vm8 = vweird.f32 %v1591_v45  ;;  %v2421_v35 = vpop.f32.mrf.mxu0 }
  0xe6   :  { %vm518_vm10 = vmor %vm516_vm9, %vm517_vm8 }
  0xe7   :  { %v513_v30 = vsub.f32 1.0, %v512_v18  ;;  %v1593_v60 = vpop.eup %1592 }
  0xe9   :  { %v514_v58 = vmul.f32 %v1591_v45, %v513_v30  ;;  %v2993_v30 = vld [vmem:[#allocation12_spill] sm:$0xff] }
  0xeb   :  { %v515_v55 = vadd.f32 %v1591_v45, %v514_v58 }
  0xed   :  { %v519_v52 = vsel %vm518_vm10, %v1591_v45, %v515_v55  ;;  %v2997_v55 = vld [vmem:[#allocation19_spill] sm:$0xff] }
  0xee   :  { %v524_v37 = vsel %vm521_vm11, %v523_v62, %v519_v52  ;;  %v553_v45 = vadd.f32 %v2998_v6, %v2997_v55 }
  0xef   :  { %v530_v42 = vsub.f32 1.0, %v524_v37  ;;  %v532_v49 = vmul.f32 0.0, %v524_v37 }
  0xf1   :  { %v531_v11 = vmul.f32 %v1593_v60, %v530_v42 }
  0xf3   :  { %v2364_v17 = vadd.f32 %v532_v49, %v531_v11 }
  0xf5   :  { %v542_v18 = vsel %vm541_vm12, %v2364_v17, 0.0  ;;  %571 = vmatmul.f32.vlgmr.msrb.gmra.mxu0 %v2364_v17  ;;  %591 = vmatmul.f32.vlgmr.msrb.gmra.mxu1 %v2364_v17 }
  0xf6   :  { %v543_v58 = vpack.c.bf16 %v542_v18, %v542_v18  ;;  %611 = vmatmul.f32.vlgmr.msra.gmra.mxu3 %v2364_v17  ;;  %857 = vmatpush.msrb.mxu0 %v2041_v3  ;;  %v3000_v18 = vld [vmem:[#allocation13_spill] sm:$0xff] }
  0xf7   :  { %948 = vmatpush.msrb.mxu1 %v1838_v26  ;;  %968 = vmatpush.msra.mxu3 %v1807_v10  ;;  %v2988_v10 = vld [vmem:[#allocation8_spill] sm:$0xff]  ;;  %vm797_vm13 = vcmp.gt.s32.totalorder %v3000_v18, 2 }
  0xf8   :  { %544 = vst [vmem:[%s2936_s8] sm:$0xf] %v543_v58  ;;  %858 = vmatpush.msrb.mxu0 %v2055_v5  ;;  %v3001_v58 = vmov 0  }
  0xf9   :  { %949 = vmatpush.msrb.mxu1 %v1865_v33  ;;  %969 = vmatpush.msra.mxu3 %v1812_v13  ;;  %v2989_v13 = vld [vmem:[#allocation14_spill] sm:$0xff]  ;;  %2995 = vst [vmem:[#allocation8_spill] sm:$0xff] %v2421_v35 }
  0xfa   :  { %859 = vmatpush.msrb.mxu0 %v2074_v7  ;;  %2996 = vst [vmem:[#allocation14_spill] sm:$0xff] %v2423_v32  ;;  %v798_v32 = vsel %vm797_vm13, 1, %v3001_v58 }
  0xfb   :  { %950 = vmatpush.msrb.mxu1 %v1876_v36  ;;  %970 = vmatpush.msra.mxu3 %v1820_v16  ;;  %v2990_v16 = vld [vmem:[#allocation11_spill] sm:$0xff] }
  0xfc   :  { %860 = vmatpush.msrb.mxu0 %v2084_v9  ;;  %800 = vperm.xlu1 %1581, %v798_v32  }
  0xfd   :  { %951 = vmatpush.msrb.mxu1 %v1898_v40  ;;  %971 = vmatpush.msra.mxu3 %v1832_v22  ;;  %v2991_v22 = vld [vmem:[#allocation9_spill] sm:$0xff] }
  0xfe   :  { %861 = vmatpush.msrb.mxu0 %v2097_v12 }
  0xff   :  { %952 = vmatpush.msrb.mxu1 %v1912_v43  ;;  %972 = vmatpush.msra.mxu3 %v1844_v27  ;;  %v2992_v27 = vld [vmem:[#allocation15_spill] sm:$0xff] }
 0x100   :  { %862 = vmatpush.msrb.mxu0 %v2106_v14 }
 0x101   :  { %953 = vmatpush.msrb.mxu1 %v1924_v46  ;;  %973 = vmatpush.msra.mxu3 %v1858_v31 }
 0x102   :  { %863 = vmatpush.msrb.mxu0 %v2121_v15 }
 0x103   :  { %954 = vmatpush.msrb.mxu1 %v1943_v51  ;;  %974 = vmatpush.msra.mxu3 %v1871_v34 }
 0x104   :  { %864 = vmatpush.msrb.mxu0 %v2135_v19 }
 0x105   :  { %955 = vmatpush.msrb.mxu1 %v1956_v54  ;;  %975 = vmatpush.msra.mxu3 %v1890_v38 }
 0x106   :  { %865 = vmatpush.msrb.mxu0 %v2144_v21 }
 0x107   :  { %956 = vmatpush.msrb.mxu1 %v1970_v57  ;;  %976 = vmatpush.msra.mxu3 %v1903_v41 }
 0x108   :  { %866 = vmatpush.msrb.mxu0 %v2153_v23 }
 0x109   :  { %957 = vmatpush.msrb.mxu1 %v1984_v59  ;;  %977 = vmatpush.msra.mxu3 %v1917_v44 }
 0x10a   :  { %867 = vmatpush.msrb.mxu0 %v2163_v24 }
 0x10b   :  { %958 = vmatpush.msrb.mxu1 %v1997_v61  ;;  %978 = vmatpush.msra.mxu3 %v1929_v47 }
 0x10c   :  { %868 = vmatpush.msrb.mxu0 %v2172_v25 }
 0x10d   :  { %959 = vmatpush.msrb.mxu1 %v2011_v63  ;;  %979 = vmatpush.msra.mxu3 %v1951_v53 }
 0x10e   :  { %869 = vmatpush.msrb.mxu0 %v2181_v28 }
 0x10f   :  { %960 = vmatpush.msrb.mxu1 %v2027_v1  ;;  %980 = vmatpush.msra.mxu3 %v1965_v56 }
 0x110   :  { %870 = vmatpush.msrb.mxu0 %v2196_v29 }
 0x111   :  { %961 = vmatpush.msrb.mxu1 %v2036_v2  ;;  %981 = vmatpush.msra.mxu3 %v2988_v10 }
 0x112   :  { %871 = vmatpush.msrb.mxu0 %v2989_v13 }
 0x113   :  { %962 = vmatpush.msrb.mxu1 %v2990_v16  ;;  %982 = vmatpush.msra.mxu3 %v2991_v22 }
 0x114   :  { %872 = vmatpush.msrb.mxu0 %v2992_v27 }
 0x115   :  { %963 = vmatpush.msrb.mxu1 %v2993_v30  ;;  %983 = vmatpush.msra.mxu3 %v2994_v48 }
 0x172   :  { %v572_v0 = vpop.f32.mrf.mxu0  ;;  %v592_v4 = vpop.f32.mrf.mxu1 }
 0x173   :  { %v615_v62 = vadd.f32 %v572_v0, %v2999_v20  ;;  %v635_v52 = vadd.f32 %v592_v4, %v553_v45 }
 0x175   :  { %v1547_v37 = vmul.f32 -1.442695, %v615_v62  ;;  %v1548_v42 = vmul.f32 -1.442695, %v635_v52 }
 0x177   :  { %1594 = vpow2.f32 %v1547_v37 }
 0x178   :  { %1596 = vpow2.f32 %v1548_v42 }
 0x179   :  { %v612_v42 = vpop.f32.mrf.mxu3 }
 0x17a   :  { %v655_v32 = vadd.f32 %v2356_v39, %v612_v42 }
 0x17d   :  { %v1595_v50 = vpop.eup %1594 }
 0x17e   :  { %v1597_v60 = vpop.eup %1596  ;;  %v619_v11 = vadd.f32 1.0, %v1595_v50 }
 0x17f   :  { %v639_v49 = vadd.f32 1.0, %v1597_v60 }
 0x180   :  { %1598 = vrcp.f32 %v619_v11  ;;  %v631_v20 = vand.u32 2147483648, %v619_v11  ;;  %v629_v52 = vand.u32 2147483647, %v619_v11  ;;  %vm625_vm15 = vweird.f32 %v619_v11 }
 0x181   :  { %1600 = vrcp.f32 %v639_v49  ;;  %v651_v48 = vand.u32 2147483648, %v639_v49  ;;  %vm645_vm3 = vweird.f32 %v639_v49 }
 0x182   :  { %v632_v60 = vor.u32 1.1754944e-38, %v631_v20  ;;  %vm630_vm1 = vcmp.eq.f32.partialorder %v629_v52, 8.507059e+37 }
 0x183   :  { %v652_v27 = vor.u32 1.1754944e-38, %v651_v48 }
 0x186   :  { %v1599_v6 = vpop.eup %1598 }
 0x187   :  { %v1601_v8 = vpop.eup %1600  ;;  %v621_v35 = vmul.f32 %v1599_v6, %v619_v11  ;;  %vm626_vm14 = vweird.f32 %v1599_v6 }
 0x188   :  { %v641_v0 = vmul.f32 %v1601_v8, %v639_v49  ;;  %vm627_vm0 = vmor %vm625_vm15, %vm626_vm14  ;;  %vm646_vm2 = vweird.f32 %v1601_v8 }
 0x189   :  { %v622_v45 = vsub.f32 1.0, %v621_v35  ;;  %vm647_vm4 = vmor %vm645_vm3, %vm646_vm2 }
 0x18a   :  { %v642_v4 = vsub.f32 1.0, %v641_v0  ;;  %v649_v0 = vand.u32 2147483647, %v639_v49 }
 0x18b   :  { %v623_v62 = vmul.f32 %v1599_v6, %v622_v45  ;;  %v3002_v45 = vld [vmem:[#allocation26_spill] sm:$0xff] }
 0x18c   :  { %v643_v37 = vmul.f32 %v1601_v8, %v642_v4  ;;  %vm650_vm5 = vcmp.eq.f32.partialorder %v649_v0, 8.507059e+37 }
 0x18d   :  { %v624_v50 = vadd.f32 %v1599_v6, %v623_v62 }
 0x18e   :  { %v644_v58 = vadd.f32 %v1601_v8, %v643_v37 }
 0x18f   :  { %v628_v55 = vsel %vm627_vm0, %v1599_v6, %v624_v50  ;;  %v670_v6 = vpop.permute.xlu0 %669 }
 0x190   :  { %v633_v18 = vsel %vm630_vm1, %v632_v60, %v628_v55  ;;  %v648_v4 = vsel %vm647_vm4, %v1601_v8, %v644_v58  ;;  %vm671_vm6 = vcmp.eq.s32.totalorder %v670_v6, 1  ;;  %v3010_v6 = vld [vmem:[#allocation29_spill] sm:$0xff] }
 0x191   :  { %v656_v35 = vmul.f32 %v655_v32, %v633_v18  ;;  %v653_v11 = vsel %vm650_vm5, %v652_v27, %v648_v4 }
 0x192   :  { %v659_v20 = vsub.f32 1.0, %v653_v11  ;;  %v661_v37 = vmul.f32 %v653_v11, %v2364_v17  ;;  %v2444_v17 = vld [vmem:[%s2934_s6 + $0x170] sm:$0xff] }
 0x193   :  { %v657_v30 = vadd.f32 %v656_v35, %v3002_v45 }
 0x195   :  { %1602 = vtanh.f32 %v657_v30 }
 0x19b   :  { %v1603_v62 = vpop.eup %1602 }
 0x19c   :  { %v660_v52 = vmul.f32 %v1603_v62, %v659_v20 }
 0x19e   :  { %v2433_v55 = vadd.f32 %v661_v37, %v660_v52 }
 0x1a0   :  { %v672_v18 = vsel %vm671_vm6, %v2433_v55, 0.0  ;;  %702 = vmatmul.f32.vlgmr.msrb.gmra.mxu2 %v2433_v55  ;;  %722 = vmatmul.f32.vlgmr.msra.gmra.mxu0 %v2433_v55 }
 0x1a1   :  { %v673_v8 = vpack.c.bf16 %v672_v18, %v672_v18  ;;  %742 = vmatmul.f32.vlgmr.msra.gmra.mxu1 %v2433_v55  ;;  %988 = vmatpush.msrb.mxu2 %v2041_v3  ;;  %v2455_v3 = vld [vmem:[%s2934_s6 + $0x158] sm:$0xff] }
 0x1a2   :  { %1079 = vmatpush.msra.mxu0 %v1838_v26  ;;  %1099 = vmatpush.msra.mxu1 %v2444_v17  ;;  %v2463_v26 = vld [vmem:[%s2934_s6 + $0x140] sm:$0xff] }
 0x1a3   :  { %1549 = vst [vmem:[%s2936_s8 + $0x4] sm:$0xf] %v673_v8  ;;  %989 = vmatpush.msrb.mxu2 %v2055_v5  ;;  %v801_v8 = vpop.permute.xlu1 %800 }
 0x1a4   :  { %1080 = vmatpush.msra.mxu0 %v1865_v33  ;;  %1100 = vmatpush.msra.mxu1 %v2455_v3  ;;  %v2471_v33 = vld [vmem:[%s2934_s6 + $0x128] sm:$0xff]  ;;  %vm802_vm0 = vcmp.eq.s32.totalorder %v801_v8, 1 }
 0x1a5   :  { %990 = vmatpush.msrb.mxu2 %v2074_v7 }
 0x1a6   :  { %1081 = vmatpush.msra.mxu0 %v1876_v36  ;;  %1101 = vmatpush.msra.mxu1 %v2463_v26  ;;  %v2479_v36 = vld [vmem:[%s2934_s6 + $0x110] sm:$0xff] }
 0x1a7   :  { %991 = vmatpush.msrb.mxu2 %v2084_v9 }
 0x1a8   :  { %1082 = vmatpush.msra.mxu0 %v1898_v40  ;;  %1102 = vmatpush.msra.mxu1 %v2471_v33 }
 0x1a9   :  { %992 = vmatpush.msrb.mxu2 %v2097_v12 }
 0x1aa   :  { %1083 = vmatpush.msra.mxu0 %v1912_v43  ;;  %1103 = vmatpush.msra.mxu1 %v2479_v36 }
 0x1ab   :  { %993 = vmatpush.msrb.mxu2 %v2106_v14 }
 0x1ac   :  { %1084 = vmatpush.msra.mxu0 %v1924_v46  ;;  %1104 = vmatpush.msra.mxu1 %v1858_v31  ;;  %v3003_v31 = vld [vmem:[#allocation15_spill] sm:$0xff] }
 0x1ad   :  { %994 = vmatpush.msrb.mxu2 %v2121_v15 }
 0x1ae   :  { %1085 = vmatpush.msra.mxu0 %v1943_v51  ;;  %1105 = vmatpush.msra.mxu1 %v1871_v34  ;;  %v3004_v34 = vld [vmem:[#allocation12_spill] sm:$0xff] }
 0x1af   :  { %995 = vmatpush.msrb.mxu2 %v2135_v19 }
 0x1b0   :  { %1086 = vmatpush.msra.mxu0 %v1956_v54  ;;  %1106 = vmatpush.msra.mxu1 %v1890_v38  ;;  %v3005_v38 = vld [vmem:[#allocation10_spill] sm:$0xff] }
 0x1b1   :  { %996 = vmatpush.msrb.mxu2 %v2144_v21 }
 0x1b2   :  { %1087 = vmatpush.msra.mxu0 %v1970_v57  ;;  %1107 = vmatpush.msra.mxu1 %v1903_v41  ;;  %v3006_v41 = vld [vmem:[#allocation20_spill] sm:$0xff] }
 0x1b3   :  { %997 = vmatpush.msrb.mxu2 %v2153_v23 }
 0x1b4   :  { %1088 = vmatpush.msra.mxu0 %v1984_v59  ;;  %1108 = vmatpush.msra.mxu1 %v1917_v44 }
 0x1b5   :  { %998 = vmatpush.msrb.mxu2 %v2163_v24 }
 0x1b6   :  { %1089 = vmatpush.msra.mxu0 %v1997_v61  ;;  %1109 = vmatpush.msra.mxu1 %v1929_v47  ;;  %v3007_v47 = vld [vmem:[#allocation18_spill] sm:$0xff] }
 0x1b7   :  { %999 = vmatpush.msrb.mxu2 %v2172_v25 }
 0x1b8   :  { %1090 = vmatpush.msra.mxu0 %v2011_v63  ;;  %1110 = vmatpush.msra.mxu1 %v1951_v53  ;;  %v3008_v63 = vld [vmem:[#allocation13_spill] sm:$0xff] }
 0x1b9   :  { %1000 = vmatpush.msrb.mxu2 %v2181_v28  ;;  %vm928_vm7 = vcmp.gt.s32.totalorder %v3008_v63, 3  ;;  %v2643_v63 = vld [vmem:[%s2934_s6 + $0x98] sm:$0xff] }
 0x1ba   :  { %1091 = vmatpush.msra.mxu0 %v2027_v1  ;;  %1111 = vmatpush.msra.mxu1 %v1965_v56 }
 0x1bb   :  { %1001 = vmatpush.msrb.mxu2 %v2196_v29 }
 0x1bc   :  { %1092 = vmatpush.msra.mxu0 %v2036_v2  ;;  %1112 = vmatpush.msra.mxu1 %v2988_v10  ;;  %v3009_v2 = vmov 0  }
 0x1bd   :  { %1002 = vmatpush.msrb.mxu2 %v2989_v13  ;;  %v929_v5 = vsel %vm928_vm7, 1, %v3009_v2 }
 0x1be   :  { %1093 = vmatpush.msra.mxu0 %v2990_v16  ;;  %1113 = vmatpush.msra.mxu1 %v2991_v22 }
 0x1bf   :  { %1003 = vmatpush.msrb.mxu2 %v3003_v31  ;;  %931 = vperm.xlu1 %1581, %v929_v5   ;;  %v2669_v5 = vld [vmem:[%s2934_s6 + $0x68] sm:$0xff] }
 0x1c0   :  { %1094 = vmatpush.msra.mxu0 %v3004_v34  ;;  %1114 = vmatpush.msra.mxu1 %v3005_v38 }
 0x21d   :  { %v723_v40 = vpop.f32.mrf.mxu0 }
 0x21e   :  { %v766_v43 = vadd.f32 %v723_v40, %v3006_v41  ;;  %v743_v42 = vpop.f32.mrf.mxu1 }
 0x21f   :  { %v786_v32 = vadd.f32 %v2356_v39, %v743_v42  ;;  %v3012_v42 = vld [vmem:[#allocation22_spill] sm:$0xff] }
 0x220   :  { %v1551_v44 = vmul.f32 -1.442695, %v766_v43 }
 0x222   :  { %1604 = vpow2.f32 %v1551_v44 }
 0x223   :  { %v703_v46 = vpop.f32.mrf.mxu2 }
 0x224   :  { %v746_v51 = vadd.f32 %v703_v46, %v3007_v47  ;;  %v2531_v47 = vld [vmem:[%s2934_s6 + $0x178] sm:$0xff] }
 0x226   :  { %v1550_v53 = vmul.f32 -1.442695, %v746_v51  ;;  %v2547_v51 = vld [vmem:[%s2934_s6 + $0x160] sm:$0xff] }
 0x228   :  { %v1605_v54 = vpop.eup %1604  ;;  %1606 = vpow2.f32 %v1550_v53  ;;  %v2553_v53 = vld [vmem:[%s2934_s6 + $0x150] sm:$0xff] }
 0x229   :  { %v770_v56 = vadd.f32 1.0, %v1605_v54  ;;  %v2561_v54 = vld [vmem:[%s2934_s6 + $0x138] sm:$0xff] }
 0x22b   :  { %1608 = vrcp.f32 %v770_v56  ;;  %v782_v4 = vand.u32 2147483648, %v770_v56  ;;  %vm776_vm13 = vweird.f32 %v770_v56  ;;  %v780_v20 = vand.u32 2147483647, %v770_v56 }
 0x22d   :  { %v783_v37 = vor.u32 1.1754944e-38, %v782_v4  ;;  %vm781_vm15 = vcmp.eq.f32.partialorder %v780_v20, 8.507059e+37  ;;  %v2729_v4 = vld [vmem:[%s2930_s2] sm:$0xff] }
 0x22e   :  { %v1607_v57 = vpop.eup %1606  ;;  %vm1059_vm1 = vcmp.gt.s32.totalorder %v2729_v4, 4 }
 0x22f   :  { %v750_v59 = vadd.f32 1.0, %v1607_v57  ;;  %v2604_v57 = vld [vmem:[%s2934_s6 + $0xe0] sm:$0xff] }
 0x231   :  { %1610 = vrcp.f32 %v750_v59  ;;  %v1609_v61 = vpop.eup %1608  ;;  %v762_v30 = vand.u32 2147483648, %v750_v59  ;;  %v760_v49 = vand.u32 2147483647, %v750_v59  ;;  %vm756_vm9 = vweird.f32 %v750_v59 }
 0x232   :  { %v772_v1 = vmul.f32 %v1609_v61, %v770_v56  ;;  %vm777_vm12 = vweird.f32 %v1609_v61  ;;  %v2569_v56 = vld [vmem:[%s2934_s6 + $0x120] sm:$0xff] }
 0x233   :  { %v763_v60 = vor.u32 1.1754944e-38, %v762_v30  ;;  %vm761_vm11 = vcmp.eq.f32.partialorder %v760_v49, 8.507059e+37  ;;  %vm778_vm14 = vmor %vm776_vm13, %vm777_vm12  ;;  %v3011_v49 = vld [vmem:[#allocation21_spill] sm:$0xff] }
 0x234   :  { %v773_v22 = vsub.f32 1.0, %v772_v1  ;;  %v2656_v1 = vld [vmem:[%s2934_s6 + $0x80] sm:$0xff] }
 0x236   :  { %v774_v58 = vmul.f32 %v1609_v61, %v773_v22  ;;  %v2708_v22 = vld [vmem:[%s2934_s6 + $0x20] sm:$0xff] }
 0x237   :  { %v1611_v10 = vpop.eup %1610 }
 0x238   :  { %v752_v16 = vmul.f32 %v1611_v10, %v750_v59  ;;  %vm757_vm8 = vweird.f32 %v1611_v10  ;;  %v775_v0 = vadd.f32 %v1609_v61, %v774_v58  ;;  %v2617_v59 = vld [vmem:[%s2934_s6 + $0xc8] sm:$0xff] }
 0x239   :  { %vm758_vm10 = vmor %vm756_vm9, %vm757_vm8 }
 0x23a   :  { %v753_v27 = vsub.f32 1.0, %v752_v16  ;;  %v779_v52 = vsel %vm778_vm14, %v1609_v61, %v775_v0  ;;  %v2630_v61 = vld [vmem:[%s2934_s6 + $0xb0] sm:$0xff]  ;;  %v2695_v16 = vld [vmem:[%s2934_s6 + $0x38] sm:$0xff] }
 0x23b   :  { %v784_v18 = vsel %vm781_vm15, %v783_v37, %v779_v52 }
 0x23c   :  { %v754_v48 = vmul.f32 %v1611_v10, %v753_v27  ;;  %v790_v34 = vsub.f32 1.0, %v784_v18  ;;  %v792_v41 = vmul.f32 %v784_v18, %v2433_v55  ;;  %v2537_v55 = vld [vmem:[%s2934_s6 + $0x168] sm:$0xff] }
 0x23d   :  { %v2721_v27 = vld [vmem:[%s2934_s6 + $0x8] sm:$0xff] }
 0x23e   :  { %v755_v50 = vadd.f32 %v1611_v10, %v754_v48 }
 0x240   :  { %v759_v35 = vsel %vm758_vm10, %v1611_v10, %v755_v50  ;;  %v2682_v10 = vld [vmem:[%s2934_s6 + $0x50] sm:$0xff] }
 0x241   :  { %v764_v45 = vsel %vm761_vm11, %v763_v60, %v759_v35  ;;  %vm1190_vm11 = vcmp.gt.s32.totalorder %v2729_v4, 5 }
 0x242   :  { %v787_v11 = vmul.f32 %v786_v32, %v764_v45 }
 0x244   :  { %v788_v62 = vadd.f32 %v787_v11, %v3010_v6  ;;  %v1060_v11 = vsel %vm1059_vm1, 1, %v3009_v2 }
 0x245   :  { %1062 = vperm.xlu2 %1582, %v1060_v11  }
 0x246   :  { %1612 = vtanh.f32 %v788_v62 }
 0x24c   :  { %v1613_v38 = vpop.eup %1612 }
 0x24d   :  { %v791_v40 = vmul.f32 %v1613_v38, %v790_v34 }
 0x24f   :  { %v2522_v43 = vadd.f32 %v792_v41, %v791_v40 }
 0x251   :  { %v803_v44 = vsel %vm802_vm0, %v2522_v43, 0.0  ;;  %833 = vmatmul.f32.vlgmr.msrb.gmra.mxu3 %v2522_v43  ;;  %853 = vmatmul.f32.vlgmr.msra.gmra.mxu2 %v2522_v43 }
 0x252   :  { %v804_v46 = vpack.c.bf16 %v803_v44, %v803_v44  ;;  %873 = vmatmul.f32.vlgmr.msrb.gmra.mxu0 %v2522_v43  ;;  %1119 = vmatpush.msrb.mxu3 %v2531_v47 }
 0x253   :  { %1210 = vmatpush.msra.mxu2 %v2537_v55  ;;  %1230 = vmatpush.msrb.mxu0 %v2444_v17 }
 0x254   :  { %1552 = vst [vmem:[%s2936_s8 + $0x8] sm:$0xf] %v804_v46  ;;  %1120 = vmatpush.msrb.mxu3 %v2547_v51 }
 0x255   :  { %1211 = vmatpush.msra.mxu2 %v2553_v53  ;;  %1231 = vmatpush.msrb.mxu0 %v2455_v3 }
 0x256   :  { %1121 = vmatpush.msrb.mxu3 %v2074_v7  ;;  %v2577_v7 = vld [vmem:[%s2934_s6 + $0x108] sm:$0xff] }
 0x257   :  { %1212 = vmatpush.msra.mxu2 %v2561_v54  ;;  %1232 = vmatpush.msrb.mxu0 %v2463_v26 }
 0x258   :  { %1122 = vmatpush.msrb.mxu3 %v2084_v9  ;;  %v2585_v9 = vld [vmem:[%s2934_s6 + $0xf0] sm:$0xff] }
 0x259   :  { %1213 = vmatpush.msra.mxu2 %v2569_v56  ;;  %1233 = vmatpush.msrb.mxu0 %v2471_v33 }
 0x25a   :  { %1123 = vmatpush.msrb.mxu3 %v2097_v12  ;;  %v2591_v12 = vld [vmem:[%s2934_s6 + $0xf8] sm:$0xff] }
 0x25b   :  { %1214 = vmatpush.msra.mxu2 %v2577_v7  ;;  %1234 = vmatpush.msrb.mxu0 %v2479_v36 }
 0x25c   :  { %1124 = vmatpush.msrb.mxu3 %v2106_v14  ;;  %v2598_v14 = vld [vmem:[%s2934_s6 + $0xd8] sm:$0xff] }
 0x25d   :  { %1215 = vmatpush.msra.mxu2 %v2585_v9  ;;  %1235 = vmatpush.msrb.mxu0 %v2591_v12 }
 0x25e   :  { %1125 = vmatpush.msrb.mxu3 %v2121_v15  ;;  %v2611_v15 = vld [vmem:[%s2934_s6 + $0xc0] sm:$0xff] }
 0x25f   :  { %1216 = vmatpush.msra.mxu2 %v2598_v14  ;;  %1236 = vmatpush.msrb.mxu0 %v2604_v57 }
 0x260   :  { %1126 = vmatpush.msrb.mxu3 %v2135_v19  ;;  %v2624_v19 = vld [vmem:[%s2934_s6 + $0xa8] sm:$0xff] }
 0x261   :  { %1217 = vmatpush.msra.mxu2 %v2611_v15  ;;  %1237 = vmatpush.msrb.mxu0 %v2617_v59 }
 0x262   :  { %1127 = vmatpush.msrb.mxu3 %v2144_v21  ;;  %v2637_v21 = vld [vmem:[%s2934_s6 + $0x90] sm:$0xff] }
 0x263   :  { %1218 = vmatpush.msra.mxu2 %v2624_v19  ;;  %1238 = vmatpush.msrb.mxu0 %v2630_v61 }
 0x264   :  { %1128 = vmatpush.msrb.mxu3 %v2153_v23  ;;  %v2650_v23 = vld [vmem:[%s2934_s6 + $0x78] sm:$0xff] }
 0x265   :  { %1219 = vmatpush.msra.mxu2 %v2637_v21  ;;  %1239 = vmatpush.msrb.mxu0 %v2643_v63 }
 0x266   :  { %1129 = vmatpush.msrb.mxu3 %v2163_v24  ;;  %v2663_v24 = vld [vmem:[%s2934_s6 + $0x60] sm:$0xff] }
 0x267   :  { %1220 = vmatpush.msra.mxu2 %v2650_v23  ;;  %1240 = vmatpush.msrb.mxu0 %v2656_v1 }
 0x268   :  { %1130 = vmatpush.msrb.mxu3 %v2172_v25  ;;  %v2676_v25 = vld [vmem:[%s2934_s6 + $0x48] sm:$0xff] }
 0x269   :  { %1221 = vmatpush.msra.mxu2 %v2663_v24  ;;  %1241 = vmatpush.msrb.mxu0 %v2669_v5 }
 0x26a   :  { %1131 = vmatpush.msrb.mxu3 %v2181_v28  ;;  %v2689_v28 = vld [vmem:[%s2934_s6 + $0x30] sm:$0xff] }
 0x26b   :  { %1222 = vmatpush.msra.mxu2 %v2676_v25  ;;  %1242 = vmatpush.msrb.mxu0 %v2682_v10 }
 0x26c   :  { %1132 = vmatpush.msrb.mxu3 %v2196_v29  ;;  %v2702_v29 = vld [vmem:[%s2934_s6 + $0x18] sm:$0xff] }
 0x26d   :  { %1223 = vmatpush.msra.mxu2 %v2689_v28  ;;  %1243 = vmatpush.msrb.mxu0 %v2695_v16 }
 0x26e   :  { %1133 = vmatpush.msrb.mxu3 %v2989_v13  ;;  %v2715_v13 = vld [vmem:[%s2934_s6] sm:$0xff] }
 0x26f   :  { %1224 = vmatpush.msra.mxu2 %v2702_v29  ;;  %1244 = vmatpush.msrb.mxu0 %v2708_v22 }
 0x270   :  { %1134 = vmatpush.msrb.mxu3 %v3003_v31 }
 0x271   :  { %1225 = vmatpush.msra.mxu2 %v2715_v13  ;;  %1245 = vmatpush.msrb.mxu0 %v2721_v27 }
 0x2cf   :  { %v874_v40 = vpop.f32.mrf.mxu0 }
 0x2d4   :  { %v834_v30 = vpop.f32.mrf.mxu3  ;;  %v854_v48 = vpop.f32.mrf.mxu2 }
 0x2d5   :  { %v877_v58 = vadd.f32 %v834_v30, %v3011_v49  ;;  %v897_v31 = vadd.f32 %v854_v48, %v3012_v42  ;;  %v917_v30 = vadd.f32 %v2356_v39, %v874_v40 }
 0x2d7   :  { %v1553_v50 = vmul.f32 -1.442695, %v877_v58  ;;  %v1554_v60 = vmul.f32 -1.442695, %v897_v31 }
 0x2d9   :  { %1614 = vpow2.f32 %v1553_v50 }
 0x2da   :  { %1616 = vpow2.f32 %v1554_v60  ;;  %v3013_v60 = vld [vmem:[#allocation32_spill] sm:$0xff] }
 0x2df   :  { %v1615_v32 = vpop.eup %1614 }
 0x2e0   :  { %v1617_v35 = vpop.eup %1616  ;;  %v881_v0 = vadd.f32 1.0, %v1615_v32 }
 0x2e1   :  { %v901_v45 = vadd.f32 1.0, %v1617_v35 }
 0x2e2   :  { %1618 = vrcp.f32 %v881_v0  ;;  %v893_v18 = vand.u32 2147483648, %v881_v0  ;;  %v891_v38 = vand.u32 2147483647, %v881_v0  ;;  %vm887_vm3 = vweird.f32 %v881_v0 }
 0x2e3   :  { %1620 = vrcp.f32 %v901_v45  ;;  %v913_v31 = vand.u32 2147483648, %v901_v45  ;;  %vm907_vm7 = vweird.f32 %v901_v45  ;;  %v911_v50 = vand.u32 2147483647, %v901_v45 }
 0x2e4   :  { %v894_v46 = vor.u32 1.1754944e-38, %v893_v18  ;;  %vm892_vm5 = vcmp.eq.f32.partialorder %v891_v38, 8.507059e+37 }
 0x2e5   :  { %v914_v11 = vor.u32 1.1754944e-38, %v913_v31  ;;  %vm912_vm9 = vcmp.eq.f32.partialorder %v911_v50, 8.507059e+37 }
 0x2e8   :  { %v1619_v20 = vpop.eup %1618 }
 0x2e9   :  { %v1621_v6 = vpop.eup %1620  ;;  %v883_v62 = vmul.f32 %v1619_v20, %v881_v0  ;;  %vm888_vm2 = vweird.f32 %v1619_v20 }
 0x2ea   :  { %v903_v52 = vmul.f32 %v1621_v6, %v901_v45  ;;  %vm889_vm4 = vmor %vm887_vm3, %vm888_vm2  ;;  %vm908_vm6 = vweird.f32 %v1621_v6 }
 0x2eb   :  { %v884_v37 = vsub.f32 1.0, %v883_v62  ;;  %vm909_vm8 = vmor %vm907_vm7, %vm908_vm6  ;;  %v932_v62 = vpop.permute.xlu1 %931 }
 0x2ec   :  { %v904_v8 = vsub.f32 1.0, %v903_v52  ;;  %vm933_vm10 = vcmp.eq.s32.totalorder %v932_v62, 1 }
 0x2ed   :  { %v885_v34 = vmul.f32 %v1619_v20, %v884_v37 }
 0x2ee   :  { %v905_v41 = vmul.f32 %v1621_v6, %v904_v8 }
 0x2ef   :  { %v886_v44 = vadd.f32 %v1619_v20, %v885_v34 }
 0x2f0   :  { %v906_v58 = vadd.f32 %v1621_v6, %v905_v41 }
 0x2f1   :  { %v890_v48 = vsel %vm889_vm4, %v1619_v20, %v886_v44 }
 0x2f2   :  { %v895_v49 = vsel %vm892_vm5, %v894_v46, %v890_v48  ;;  %v910_v35 = vsel %vm909_vm8, %v1621_v6, %v906_v58  ;;  %vm1321_vm5 = vcmp.gt.s32.totalorder %v2729_v4, 6 }
 0x2f3   :  { %v918_v42 = vmul.f32 %v917_v30, %v895_v49  ;;  %v915_v0 = vsel %vm912_vm9, %v914_v11, %v910_v35 }
 0x2f4   :  { %v921_v52 = vsub.f32 1.0, %v915_v0  ;;  %v923_v18 = vmul.f32 %v915_v0, %v2522_v43  ;;  %v2754_v43 = vld [vmem:[%s2934_s6 + $0x148] sm:$0xff] }
 0x2f5   :  { %v919_v32 = vadd.f32 %v918_v42, %v3013_v60 }
 0x2f7   :  { %1622 = vtanh.f32 %v919_v32  ;;  %v3016_v32 = vld [vmem:[#allocation34_spill] sm:$0xff] }
 0x2fd   :  { %v1623_v37 = vpop.eup %1622 }
 0x2fe   :  { %v922_v20 = vmul.f32 %v1623_v37, %v921_v52  ;;  %v1063_v37 = vpop.permute.xlu2 %1062 }
 0x2ff   :  { %vm1064_vm4 = vcmp.eq.s32.totalorder %v1063_v37, 1 }
 0x300   :  { %v2736_v8 = vadd.f32 %v923_v18, %v922_v20 }
 0x302   :  { %v934_v34 = vsel %vm933_vm10, %v2736_v8, 0.0  ;;  %964 = vmatmul.f32.vlgmr.msrb.gmra.mxu1 %v2736_v8  ;;  %984 = vmatmul.f32.vlgmr.msra.gmra.mxu3 %v2736_v8 }
 0x303   :  { %v935_v45 = vpack.c.bf16 %v934_v34, %v934_v34  ;;  %1004 = vmatmul.f32.vlgmr.msrb.gmra.mxu2 %v2736_v8  ;;  %1250 = vmatpush.msrb.mxu1 %v2531_v47 }
 0x304   :  { %1341 = vmatpush.msra.mxu3 %v2537_v55  ;;  %1361 = vmatpush.msrb.mxu2 %v2444_v17  ;;  %v2762_v17 = vld [vmem:[%s2934_s6 + $0x130] sm:$0xff]  ;;  %v2802_v55 = vld [vmem:[%s2934_s6 + $0xb8] sm:$0xff] }
 0x305   :  { %1555 = vst [vmem:[%s2936_s8 + $0xc] sm:$0xf] %v935_v45  ;;  %1251 = vmatpush.msrb.mxu1 %v2547_v51 }
 0x306   :  { %1342 = vmatpush.msra.mxu3 %v2553_v53  ;;  %1362 = vmatpush.msrb.mxu2 %v2455_v3  ;;  %v2770_v3 = vld [vmem:[%s2934_s6 + $0x118] sm:$0xff]  ;;  %v2810_v53 = vld [vmem:[%s2934_s6 + $0xa0] sm:$0xff] }
 0x307   :  { %1252 = vmatpush.msrb.mxu1 %v2754_v43 }
 0x308   :  { %1343 = vmatpush.msra.mxu3 %v2561_v54  ;;  %1363 = vmatpush.msrb.mxu2 %v2463_v26  ;;  %v2778_v26 = vld [vmem:[%s2934_s6 + $0x100] sm:$0xff]  ;;  %v2818_v54 = vld [vmem:[%s2934_s6 + $0x88] sm:$0xff] }
 0x309   :  { %1253 = vmatpush.msrb.mxu1 %v2762_v17 }
 0x30a   :  { %1344 = vmatpush.msra.mxu3 %v2569_v56  ;;  %1364 = vmatpush.msrb.mxu2 %v2471_v33  ;;  %v2786_v33 = vld [vmem:[%s2934_s6 + $0xe8] sm:$0xff]  ;;  %v2826_v56 = vld [vmem:[%s2934_s6 + $0x70] sm:$0xff] }
 0x30b   :  { %1254 = vmatpush.msrb.mxu1 %v2770_v3 }
 0x30c   :  { %1345 = vmatpush.msra.mxu3 %v2577_v7  ;;  %1365 = vmatpush.msrb.mxu2 %v2479_v36  ;;  %v2794_v36 = vld [vmem:[%s2934_s6 + $0xd0] sm:$0xff]  ;;  %v2834_v7 = vld [vmem:[%s2934_s6 + $0x58] sm:$0xff] }
 0x30d   :  { %1255 = vmatpush.msrb.mxu1 %v2778_v26 }
 0x30e   :  { %1346 = vmatpush.msra.mxu3 %v2585_v9  ;;  %1366 = vmatpush.msrb.mxu2 %v2591_v12  ;;  %v2842_v9 = vld [vmem:[%s2934_s6 + $0x40] sm:$0xff]  ;;  %v2850_v12 = vld [vmem:[%s2934_s6 + $0x28] sm:$0xff] }
 0x30f   :  { %1256 = vmatpush.msrb.mxu1 %v2786_v33 }
 0x310   :  { %1347 = vmatpush.msra.mxu3 %v2598_v14  ;;  %1367 = vmatpush.msrb.mxu2 %v2604_v57  ;;  %v2858_v14 = vld [vmem:[%s2934_s6 + $0x10] sm:$0xff] }
 0x311   :  { %1257 = vmatpush.msrb.mxu1 %v2794_v36 }
 0x312   :  { %1348 = vmatpush.msra.mxu3 %v2611_v15  ;;  %1368 = vmatpush.msrb.mxu2 %v2617_v59  ;;  %v3014_v15 = vld [vmem:[#allocation24_spill] sm:$0xff] }
 0x313   :  { %1258 = vmatpush.msrb.mxu1 %v2802_v55 }
 0x314   :  { %1349 = vmatpush.msra.mxu3 %v2624_v19  ;;  %1369 = vmatpush.msrb.mxu2 %v2630_v61 }
 0x315   :  { %1259 = vmatpush.msrb.mxu1 %v2810_v53 }
 0x316   :  { %1350 = vmatpush.msra.mxu3 %v2637_v21  ;;  %1370 = vmatpush.msrb.mxu2 %v2643_v63  ;;  %v3015_v21 = vld [vmem:[#allocation25_spill] sm:$0xff] }
 0x317   :  { %1260 = vmatpush.msrb.mxu1 %v2818_v54 }
 0x318   :  { %1351 = vmatpush.msra.mxu3 %v2650_v23  ;;  %1371 = vmatpush.msrb.mxu2 %v2656_v1 }
 0x319   :  { %1261 = vmatpush.msrb.mxu1 %v2826_v56 }
 0x31a   :  { %1352 = vmatpush.msra.mxu3 %v2663_v24  ;;  %1372 = vmatpush.msrb.mxu2 %v2669_v5 }
 0x31b   :  { %1262 = vmatpush.msrb.mxu1 %v2834_v7 }
 0x31c   :  { %1353 = vmatpush.msra.mxu3 %v2676_v25  ;;  %1373 = vmatpush.msrb.mxu2 %v2682_v10  ;;  %v1191_v10 = vsel %vm1190_vm11, 1, %v3009_v2 }
 0x31d   :  { %1263 = vmatpush.msrb.mxu1 %v2842_v9  ;;  %1193 = vperm.xlu2 %1582, %v1191_v10  }
 0x31e   :  { %1354 = vmatpush.msra.mxu3 %v2689_v28  ;;  %1374 = vmatpush.msrb.mxu2 %v2695_v16 }
 0x31f   :  { %1264 = vmatpush.msrb.mxu1 %v2850_v12 }
 0x320   :  { %1355 = vmatpush.msra.mxu3 %v2702_v29  ;;  %1375 = vmatpush.msrb.mxu2 %v2708_v22 }
 0x321   :  { %1265 = vmatpush.msrb.mxu1 %v2858_v14 }
 0x322   :  { %1356 = vmatpush.msra.mxu3 %v2715_v13  ;;  %1376 = vmatpush.msrb.mxu2 %v2721_v27 }
 0x37f   :  { %v965_v57 = vpop.f32.mrf.mxu1 }
 0x380   :  { %v1008_v59 = vadd.f32 %v965_v57, %v3014_v15 }
 0x382   :  { %v1556_v19 = vmul.f32 -1.442695, %v1008_v59 }
 0x384   :  { %1624 = vpow2.f32 %v1556_v19 }
 0x385   :  { %v985_v61 = vpop.f32.mrf.mxu3 }
 0x386   :  { %v1028_v63 = vadd.f32 %v985_v61, %v3015_v21  ;;  %v1005_v38 = vpop.f32.mrf.mxu2 }
 0x387   :  { %v1048_v48 = vadd.f32 %v2356_v39, %v1005_v38 }
 0x388   :  { %v1557_v23 = vmul.f32 -1.442695, %v1028_v63 }
 0x38a   :  { %v1625_v1 = vpop.eup %1624  ;;  %1626 = vpow2.f32 %v1557_v23 }
 0x38b   :  { %v1012_v24 = vadd.f32 1.0, %v1625_v1 }
 0x38d   :  { %1628 = vrcp.f32 %v1012_v24  ;;  %v1024_v22 = vand.u32 2147483648, %v1012_v24  ;;  %v1022_v27 = vand.u32 2147483647, %v1012_v24  ;;  %vm1018_vm13 = vweird.f32 %v1012_v24 }
 0x38f   :  { %v1025_v44 = vor.u32 1.1754944e-38, %v1024_v22  ;;  %vm1023_vm15 = vcmp.eq.f32.partialorder %v1022_v27, 8.507059e+37  ;;  %v3019_v27 = vld [vmem:[#allocation35_spill] sm:$0xff] }
 0x390   :  { %v1627_v5 = vpop.eup %1626 }
 0x391   :  { %v1032_v25 = vadd.f32 1.0, %v1627_v5 }
 0x393   :  { %v1629_v28 = vpop.eup %1628  ;;  %1630 = vrcp.f32 %v1032_v25  ;;  %v1044_v42 = vand.u32 2147483648, %v1032_v25  ;;  %v1042_v50 = vand.u32 2147483647, %v1032_v25  ;;  %vm1038_vm1 = vweird.f32 %v1032_v25 }
 0x394   :  { %v1014_v16 = vmul.f32 %v1629_v28, %v1012_v24  ;;  %vm1019_vm12 = vweird.f32 %v1629_v28 }
 0x395   :  { %vm1020_vm14 = vmor %vm1018_vm13, %vm1019_vm12  ;;  %v1045_v11 = vor.u32 1.1754944e-38, %v1044_v42  ;;  %vm1043_vm3 = vcmp.eq.f32.partialorder %v1042_v50, 8.507059e+37 }
 0x396   :  { %v1015_v29 = vsub.f32 1.0, %v1014_v16 }
 0x398   :  { %v1016_v13 = vmul.f32 %v1629_v28, %v1015_v29 }
 0x399   :  { %v1631_v6 = vpop.eup %1630 }
 0x39a   :  { %v1034_v40 = vmul.f32 %v1631_v6, %v1032_v25  ;;  %v1017_v41 = vadd.f32 %v1629_v28, %v1016_v13  ;;  %vm1039_vm0 = vweird.f32 %v1631_v6  ;;  %v2902_v25 = vld [vmem:[%s2935_s7] ss:$0 sm:$0xff] }
 0x39b   :  { %vm1040_vm2 = vmor %vm1038_vm1, %vm1039_vm0 }
 0x39c   :  { %v1035_v46 = vsub.f32 1.0, %v1034_v40  ;;  %v1021_v30 = vsel %vm1020_vm14, %v1629_v28, %v1017_v41 }
 0x39d   :  { %v1026_v49 = vsel %vm1023_vm15, %v1025_v44, %v1021_v30  ;;  %vm1452_vm15 = vcmp.gt.s32.totalorder %v2729_v4, 7 }
 0x39e   :  { %v1036_v58 = vmul.f32 %v1631_v6, %v1035_v46  ;;  %v1049_v31 = vmul.f32 %v1048_v48, %v1026_v49  ;;  %v1194_v46 = vpop.permute.xlu2 %1193 }
 0x39f   :  { %vm1195_vm14 = vcmp.eq.s32.totalorder %v1194_v46, 1 }
 0x3a0   :  { %v1037_v60 = vadd.f32 %v1631_v6, %v1036_v58  ;;  %v1050_v35 = vadd.f32 %v1049_v31, %v3016_v32 }
 0x3a2   :  { %v1041_v0 = vsel %vm1040_vm2, %v1631_v6, %v1037_v60  ;;  %1632 = vtanh.f32 %v1050_v35  ;;  %v3020_v60 = vld [vmem:[#allocation31_spill] sm:$0xff] }
 0x3a3   :  { %v1046_v62 = vsel %vm1043_vm3, %v1045_v11, %v1041_v0  ;;  %v3021_v0 = vld [vmem:[#allocation30_spill] sm:$0xff] }
 0x3a4   :  { %v1052_v52 = vsub.f32 1.0, %v1046_v62  ;;  %v1054_v18 = vmul.f32 %v1046_v62, %v2736_v8  ;;  %v3017_v8 = vld [vmem:[#allocation27_spill] sm:$0xff] }
 0x3a8   :  { %v1633_v20 = vpop.eup %1632 }
 0x3a9   :  { %v1053_v39 = vmul.f32 %v1633_v20, %v1052_v52 }
 0x3ab   :  { %v2870_v34 = vadd.f32 %v1054_v18, %v1053_v39 }
 0x3ad   :  { %v1065_v45 = vsel %vm1064_vm4, %v2870_v34, 0.0  ;;  %1095 = vmatmul.f32.vlgmr.msra.gmra.mxu0 %v2870_v34  ;;  %1115 = vmatmul.f32.vlgmr.msra.gmra.mxu1 %v2870_v34 }
 0x3ae   :  { %v1066_v57 = vpack.c.bf16 %v1065_v45, %v1065_v45  ;;  %1135 = vmatmul.f32.vlgmr.msrb.gmra.mxu3 %v2870_v34  ;;  %1381 = vmatpush.msra.mxu0 %v2531_v47 }
 0x3b0   :  { %1558 = vst [vmem:[%s2936_s8 + $0x10] sm:$0xf] %v1066_v57  ;;  %1382 = vmatpush.msra.mxu0 %v2547_v51  ;;  %v1453_v57 = vsel %vm1452_vm15, 1, %v3009_v2 }
 0x3b1   :  { %1455 = vperm.xlu1 %1581, %v1453_v57   ;;  %v3026_v57 = vld [vmem:[#allocation23_spill] sm:$0xff] }
 0x3b2   :  { %1383 = vmatpush.msra.mxu0 %v2754_v43 }
 0x3b4   :  { %1384 = vmatpush.msra.mxu0 %v2762_v17  ;;  %v3018_v17 = vld [vmem:[#allocation28_spill] sm:$0xff] }
 0x3b6   :  { %1385 = vmatpush.msra.mxu0 %v2770_v3 }
 0x3b8   :  { %1386 = vmatpush.msra.mxu0 %v2778_v26 }
 0x3ba   :  { %1387 = vmatpush.msra.mxu0 %v2786_v33 }
 0x3bc   :  { %1388 = vmatpush.msra.mxu0 %v2794_v36 }
 0x3be   :  { %1389 = vmatpush.msra.mxu0 %v2802_v55 }
 0x3c0   :  { %1390 = vmatpush.msra.mxu0 %v2810_v53 }
 0x3c2   :  { %1391 = vmatpush.msra.mxu0 %v2818_v54 }
 0x3c4   :  { %1392 = vmatpush.msra.mxu0 %v2826_v56  ;;  %v1322_v56 = vsel %vm1321_vm5, 1, %v3009_v2 }
 0x3c5   :  { %1324 = vperm.xlu0 %1580, %v1322_v56  }
 0x3c6   :  { %1393 = vmatpush.msra.mxu0 %v2834_v7 }
 0x3c8   :  { %1394 = vmatpush.msra.mxu0 %v2842_v9 }
 0x3ca   :  { %1395 = vmatpush.msra.mxu0 %v2850_v12 }
 0x3cc   :  { %1396 = vmatpush.msra.mxu0 %v2858_v14 }
 0x42a   :  { %v1096_v47 = vpop.f32.mrf.mxu0  ;;  %v1116_v51 = vpop.f32.mrf.mxu1 }
 0x42b   :  { %v1139_v43 = vadd.f32 %v1096_v47, %v3017_v8  ;;  %v1159_v3 = vadd.f32 %v1116_v51, %v3018_v17 }
 0x42d   :  { %v1559_v26 = vmul.f32 -1.442695, %v1139_v43  ;;  %v1560_v33 = vmul.f32 -1.442695, %v1159_v3 }
 0x42f   :  { %1634 = vpow2.f32 %v1559_v26 }
 0x430   :  { %1636 = vpow2.f32 %v1560_v33 }
 0x431   :  { %v1136_v23 = vpop.f32.mrf.mxu3 }
 0x432   :  { %v1179_v10 = vadd.f32 %v2902_v25, %v1136_v23 }
 0x435   :  { %v1635_v36 = vpop.eup %1634 }
 0x436   :  { %v1637_v55 = vpop.eup %1636  ;;  %v1143_v53 = vadd.f32 1.0, %v1635_v36 }
 0x437   :  { %v1163_v54 = vadd.f32 1.0, %v1637_v55 }
 0x438   :  { %1638 = vrcp.f32 %v1143_v53  ;;  %v1155_v19 = vand.u32 2147483648, %v1143_v53  ;;  %v1153_v21 = vand.u32 2147483647, %v1143_v53  ;;  %vm1149_vm7 = vweird.f32 %v1143_v53 }
 0x439   :  { %1640 = vrcp.f32 %v1163_v54  ;;  %v1175_v29 = vand.u32 2147483648, %v1163_v54  ;;  %vm1169_vm11 = vweird.f32 %v1163_v54  ;;  %v1173_v13 = vand.u32 2147483647, %v1163_v54 }
 0x43a   :  { %v1156_v24 = vor.u32 1.1754944e-38, %v1155_v19  ;;  %vm1154_vm9 = vcmp.eq.f32.partialorder %v1153_v21, 8.507059e+37  ;;  %v1325_v21 = vpop.permute.xlu0 %1324 }
 0x43b   :  { %v1176_v40 = vor.u32 1.1754944e-38, %v1175_v29  ;;  %vm1174_vm13 = vcmp.eq.f32.partialorder %v1173_v13, 8.507059e+37  ;;  %v3024_v29 = vld [vmem:[#allocation8_spill] sm:$0xff] }
 0x43e   :  { %v1639_v7 = vpop.eup %1638 }
 0x43f   :  { %v1641_v9 = vpop.eup %1640  ;;  %v1145_v12 = vmul.f32 %v1639_v7, %v1143_v53  ;;  %vm1150_vm6 = vweird.f32 %v1639_v7 }
 0x440   :  { %v1165_v14 = vmul.f32 %v1641_v9, %v1163_v54  ;;  %vm1151_vm8 = vmor %vm1149_vm7, %vm1150_vm6  ;;  %vm1170_vm10 = vweird.f32 %v1641_v9 }
 0x441   :  { %v1146_v15 = vsub.f32 1.0, %v1145_v12  ;;  %vm1171_vm12 = vmor %vm1169_vm11, %vm1170_vm10 }
 0x442   :  { %v1166_v59 = vsub.f32 1.0, %v1165_v14  ;;  %v3022_v14 = vld [vmem:[#allocation36_spill] sm:$0xff] }
 0x443   :  { %v1147_v61 = vmul.f32 %v1639_v7, %v1146_v15 }
 0x444   :  { %v1167_v63 = vmul.f32 %v1641_v9, %v1166_v59 }
 0x445   :  { %v1148_v1 = vadd.f32 %v1639_v7, %v1147_v61 }
 0x446   :  { %v1168_v28 = vadd.f32 %v1641_v9, %v1167_v63 }
 0x447   :  { %v1152_v5 = vsel %vm1151_vm8, %v1639_v7, %v1148_v1  ;;  %vm1326_vm8 = vcmp.eq.s32.totalorder %v1325_v21, 1 }
 0x448   :  { %v1157_v16 = vsel %vm1154_vm9, %v1156_v24, %v1152_v5  ;;  %v1172_v38 = vsel %vm1171_vm12, %v1641_v9, %v1168_v28 }
 0x449   :  { %v1180_v22 = vmul.f32 %v1179_v10, %v1157_v16  ;;  %v1177_v41 = vsel %vm1174_vm13, %v1176_v40, %v1172_v38  ;;  %v3023_v16 = vld [vmem:[#allocation19_spill] sm:$0xff] }
 0x44a   :  { %v1183_v44 = vsub.f32 1.0, %v1177_v41  ;;  %v1185_v49 = vmul.f32 %v1177_v41, %v2870_v34 }
 0x44b   :  { %v1181_v6 = vadd.f32 %v1180_v22, %v3019_v27  ;;  %v1339_v22 = vadd.f32 %v3024_v29, %v3023_v16 }
 0x44d   :  { %1642 = vtanh.f32 %v1181_v6  ;;  %v3025_v6 = vld [vmem:[#allocation33_spill] sm:$0xff] }
 0x453   :  { %v1643_v30 = vpop.eup %1642 }
 0x454   :  { %v1184_v48 = vmul.f32 %v1643_v30, %v1183_v44 }
 0x456   :  { %v1186_v58 = vadd.f32 %v1185_v49, %v1184_v48 }
 0x458   :  { %v1196_v42 = vsel %vm1195_vm14, %v1186_v58, 0.0  ;;  %1226 = vmatmul.f32.vlgmr.msra.gmra.mxu2 %v1186_v58  ;;  %1246 = vmatmul.f32.vlgmr.msrb.gmra.mxu0 %v1186_v58 }
 0x459   :  { %v1197_v31 = vpack.c.bf16 %v1196_v42, %v1196_v42  ;;  %1266 = vmatmul.f32.vlgmr.msrb.gmra.mxu1 %v1186_v58 }
 0x45b   :  { %1561 = vst [vmem:[%s2936_s8 + $0x14] sm:$0xf] %v1197_v31 }
 0x4d5   :  { %v1247_v50 = vpop.f32.mrf.mxu0 }
 0x4d6   :  { %v1290_v32 = vadd.f32 %v1247_v50, %v3020_v60  ;;  %v1267_v36 = vpop.f32.mrf.mxu1 }
 0x4d7   :  { %v1310_v4 = vadd.f32 %v2902_v25, %v1267_v36 }
 0x4d8   :  { %v1563_v35 = vmul.f32 -1.442695, %v1290_v32 }
 0x4da   :  { %1644 = vpow2.f32 %v1563_v35 }
 0x4db   :  { %v1227_v11 = vpop.f32.mrf.mxu2 }
 0x4dc   :  { %v1270_v62 = vadd.f32 %v1227_v11, %v3021_v0 }
 0x4de   :  { %v1562_v52 = vmul.f32 -1.442695, %v1270_v62 }
 0x4e0   :  { %v1645_v37 = vpop.eup %1644  ;;  %1646 = vpow2.f32 %v1562_v52 }
 0x4e1   :  { %v1294_v20 = vadd.f32 1.0, %v1645_v37 }
 0x4e3   :  { %1648 = vrcp.f32 %v1294_v20  ;;  %v1306_v7 = vand.u32 2147483648, %v1294_v20  ;;  %vm1300_vm5 = vweird.f32 %v1294_v20  ;;  %v1304_v12 = vand.u32 2147483647, %v1294_v20 }
 0x4e5   :  { %v1307_v19 = vor.u32 1.1754944e-38, %v1306_v7  ;;  %vm1305_vm7 = vcmp.eq.f32.partialorder %v1304_v12, 8.507059e+37 }
 0x4e6   :  { %v1647_v39 = vpop.eup %1646 }
 0x4e7   :  { %v1274_v18 = vadd.f32 1.0, %v1647_v39 }
 0x4e9   :  { %1650 = vrcp.f32 %v1274_v18  ;;  %v1649_v34 = vpop.eup %1648  ;;  %v1286_v17 = vand.u32 2147483648, %v1274_v18  ;;  %v1284_v26 = vand.u32 2147483647, %v1274_v18  ;;  %vm1280_vm1 = vweird.f32 %v1274_v18 }
 0x4ea   :  { %v1296_v45 = vmul.f32 %v1649_v34, %v1294_v20  ;;  %vm1301_vm4 = vweird.f32 %v1649_v34 }
 0x4eb   :  { %v1287_v53 = vor.u32 1.1754944e-38, %v1286_v17  ;;  %vm1285_vm3 = vcmp.eq.f32.partialorder %v1284_v26, 8.507059e+37  ;;  %vm1302_vm6 = vmor %vm1300_vm5, %vm1301_vm4 }
 0x4ec   :  { %v1297_v8 = vsub.f32 1.0, %v1296_v45 }
 0x4ee   :  { %v1298_v33 = vmul.f32 %v1649_v34, %v1297_v8 }
 0x4ef   :  { %v1651_v47 = vpop.eup %1650 }
 0x4f0   :  { %v1276_v51 = vmul.f32 %v1651_v47, %v1274_v18  ;;  %vm1281_vm0 = vweird.f32 %v1651_v47  ;;  %v1299_v2 = vadd.f32 %v1649_v34, %v1298_v33 }
 0x4f1   :  { %vm1282_vm2 = vmor %vm1280_vm1, %vm1281_vm0 }
 0x4f2   :  { %v1277_v43 = vsub.f32 1.0, %v1276_v51  ;;  %v1303_v59 = vsel %vm1302_vm6, %v1649_v34, %v1299_v2 }
 0x4f3   :  { %v1308_v61 = vsel %vm1305_vm7, %v1307_v19, %v1303_v59 }
 0x4f4   :  { %v1278_v3 = vmul.f32 %v1651_v47, %v1277_v43  ;;  %v1314_v63 = vsub.f32 1.0, %v1308_v61  ;;  %v1316_v24 = vmul.f32 %v1308_v61, %v1186_v58 }
 0x4f6   :  { %v1279_v55 = vadd.f32 %v1651_v47, %v1278_v3 }
 0x4f8   :  { %v1283_v54 = vsel %vm1282_vm2, %v1651_v47, %v1279_v55  ;;  %v3027_v47 = vld [vmem:[#allocation14_spill] sm:$0xff] }
 0x4f9   :  { %v1288_v56 = vsel %vm1285_vm3, %v1287_v53, %v1283_v54  ;;  %v1340_v51 = vadd.f32 %v3027_v47, %v3026_v57  ;;  %v1456_v53 = vpop.permute.xlu1 %1455 }
 0x4fa   :  { %v1311_v9 = vmul.f32 %v1310_v4, %v1288_v56  ;;  %vm1457_vm1 = vcmp.eq.s32.totalorder %v1456_v53, 1 }
 0x4fc   :  { %v1312_v15 = vadd.f32 %v1311_v9, %v3022_v14 }
 0x4fe   :  { %1652 = vtanh.f32 %v1312_v15 }
 0x504   :  { %v1653_v23 = vpop.eup %1652 }
 0x505   :  { %v1315_v1 = vmul.f32 %v1653_v23, %v1314_v63 }
 0x507   :  { %v1317_v5 = vadd.f32 %v1316_v24, %v1315_v1 }
 0x509   :  { %v1327_v10 = vsel %vm1326_vm8, %v1317_v5, 0.0  ;;  %1357 = vmatmul.f32.vlgmr.msra.gmra.mxu3 %v1317_v5  ;;  %1377 = vmatmul.f32.vlgmr.msrb.gmra.mxu2 %v1317_v5 }
 0x50a   :  { %v1328_v28 = vpack.c.bf16 %v1327_v10, %v1327_v10  ;;  %1397 = vmatmul.f32.vlgmr.msra.gmra.mxu0 %v1317_v5 }
 0x50c   :  { %1564 = vst [vmem:[%s2936_s8 + $0x18] sm:$0xf] %v1328_v28 }
 0x587   :  { %v1398_v62 = vpop.f32.mrf.mxu0 }
 0x588   :  { %v1441_v39 = vadd.f32 %v2902_v25, %v1398_v62 }
 0x58c   :  { %v1358_v13 = vpop.f32.mrf.mxu3  ;;  %v1378_v27 = vpop.f32.mrf.mxu2 }
 0x58d   :  { %v1401_v38 = vadd.f32 %v1358_v13, %v3025_v6  ;;  %v1421_v40 = vadd.f32 %v1378_v27, %v1339_v22 }
 0x58f   :  { %v1565_v41 = vmul.f32 -1.442695, %v1401_v38  ;;  %v1566_v44 = vmul.f32 -1.442695, %v1421_v40 }
 0x591   :  { %1654 = vpow2.f32 %v1565_v41 }
 0x592   :  { %1656 = vpow2.f32 %v1566_v44 }
 0x597   :  { %v1655_v46 = vpop.eup %1654 }
 0x598   :  { %v1657_v30 = vpop.eup %1656  ;;  %v1405_v48 = vadd.f32 1.0, %v1655_v46 }
 0x599   :  { %v1425_v49 = vadd.f32 1.0, %v1657_v30 }
 0x59a   :  { %1658 = vrcp.f32 %v1405_v48  ;;  %v1417_v32 = vand.u32 2147483648, %v1405_v48  ;;  %v1415_v0 = vand.u32 2147483647, %v1405_v48  ;;  %vm1411_vm10 = vweird.f32 %v1405_v48 }
 0x59b   :  { %1660 = vrcp.f32 %v1425_v49  ;;  %v1437_v8 = vand.u32 2147483648, %v1425_v49  ;;  %vm1431_vm14 = vweird.f32 %v1425_v49  ;;  %v1435_v17 = vand.u32 2147483647, %v1425_v49 }
 0x59c   :  { %v1418_v20 = vor.u32 1.1754944e-38, %v1417_v32  ;;  %vm1416_vm12 = vcmp.eq.f32.partialorder %v1415_v0, 8.507059e+37 }
 0x59d   :  { %v1438_v33 = vor.u32 1.1754944e-38, %v1437_v8  ;;  %vm1436_vm0 = vcmp.eq.f32.partialorder %v1435_v17, 8.507059e+37 }
 0x5a0   :  { %v1659_v58 = vpop.eup %1658 }
 0x5a1   :  { %v1661_v42 = vpop.eup %1660  ;;  %v1407_v31 = vmul.f32 %v1659_v58, %v1405_v48  ;;  %vm1412_vm9 = vweird.f32 %v1659_v58 }
 0x5a2   :  { %v1427_v50 = vmul.f32 %v1661_v42, %v1425_v49  ;;  %vm1413_vm11 = vmor %vm1411_vm10, %vm1412_vm9  ;;  %vm1432_vm13 = vweird.f32 %v1661_v42 }
 0x5a3   :  { %v1408_v60 = vsub.f32 1.0, %v1407_v31  ;;  %vm1433_vm15 = vmor %vm1431_vm14, %vm1432_vm13 }
 0x5a4   :  { %v1428_v35 = vsub.f32 1.0, %v1427_v50 }
 0x5a5   :  { %v1409_v11 = vmul.f32 %v1659_v58, %v1408_v60 }
 0x5a6   :  { %v1429_v52 = vmul.f32 %v1661_v42, %v1428_v35 }
 0x5a7   :  { %v1410_v37 = vadd.f32 %v1659_v58, %v1409_v11 }
 0x5a8   :  { %v1430_v45 = vadd.f32 %v1661_v42, %v1429_v52 }
 0x5a9   :  { %v1414_v18 = vsel %vm1413_vm11, %v1659_v58, %v1410_v37 }
 0x5aa   :  { %v1419_v34 = vsel %vm1416_vm12, %v1418_v20, %v1414_v18  ;;  %v1434_v26 = vsel %vm1433_vm15, %v1661_v42, %v1430_v45 }
 0x5ab   :  { %v1442_v43 = vmul.f32 %v1441_v39, %v1419_v34  ;;  %v1439_v36 = vsel %vm1436_vm0, %v1438_v33, %v1434_v26 }
 0x5ac   :  { %v1445_v25 = vsub.f32 1.0, %v1439_v36  ;;  %v1447_v54 = vmul.f32 %v1439_v36, %v1317_v5 }
 0x5ad   :  { %v1443_v3 = vadd.f32 %v1442_v43, %v1340_v51 }
 0x5af   :  { %1662 = vtanh.f32 %v1443_v3 }
 0x5b5   :  { %v1663_v55 = vpop.eup %1662 }
 0x5b6   :  { %v1446_v4 = vmul.f32 %v1663_v55, %v1445_v25 }
 0x5b8   :  { %v1448_v2 = vadd.f32 %v1447_v54, %v1446_v4 }
 0x5ba   :  { %v1458_v56 = vsel %vm1457_vm1, %v1448_v2, 0.0 }
 0x5bb   :  { %v1459_v7 = vpack.c.bf16 %v1458_v56, %v1458_v56 }
 0x5bd   :  { %1567 = vst [vmem:[%s2936_s8 + $0x1c] sm:$0xf] %v1459_v7 }
 0x5be   :  { %1480 = vsyncpa [#allocation6], 1 }

</bundles_post_ra>
